<compile_context>
chip_gen: v7x
topology: tpu7x:2x2x1
jax: 0.10.0
libtpu: 0.0.40
codegen_flags: <defaults>
</compile_context>

<pallas_src>
import functools

import jax
import jax.numpy as jnp
from jax.experimental import pallas as pl
from jax.experimental.pallas import tpu as pltpu

EPS = 1e-06


def _vnt_leaky_relu_kernel(x_ref, w_ref, o_ref, *, c_out, negative_slope):
    """One fused block-diagonal MXU dot + slim slab-wide epilogue.

    x_ref : (tm, 3*c_in)           lane-concatenated vector components
    w_ref : (3*c_in, 3*c_out + 6)  fused weights, columns [q0|q1|q2|d0 d1 d2|o0 o1 o2]
    o_ref : (tm, 3*c_out)          lane-concatenated output components
    """
    co3 = 3 * c_out
    x = x_ref[...].astype(jnp.float32)
    w = w_ref[...]

    # Single MXU dot: all three components' q / (k-o) / o in one result value.
    r = jnp.dot(x, w, preferred_element_type=jnp.float32)        # (tm, 3*c_out + 6)

    q = r[:, :co3]                                               # (tm, 3*c_out)
    qc = [r[:, c * c_out:(c + 1) * c_out] for c in range(3)]     # 3 x (tm, c_out)
    dc = [r[:, co3 + c:co3 + c + 1] for c in range(3)]           # 3 x (tm, 1)  (= k - o)
    oc = [r[:, co3 + 3 + c:co3 + 4 + c] for c in range(3)]       # 3 x (tm, 1)

    # Reduction over the vector (3-) axis, done as fused adds.
    dotprod = (dc[0] * (qc[0] - oc[0])
               + dc[1] * (qc[1] - oc[1])
               + dc[2] * (qc[2] - oc[2]))                        # (tm, c_out)
    d_norm_sq = dc[0] * dc[0] + dc[1] * dc[1] + dc[2] * dc[2]    # (tm, 1)

    inv = pl.reciprocal(d_norm_sq + EPS, approx=False)           # (tm, 1)

    # Algebraic fold of  ns*q + (1-ns)*(mask*q + (1-mask)*(q - scale*d)):
    #   s = 0 where dotprod >= 0, else (1-ns)*dotprod/(|d|^2+eps)
    s = jnp.where(dotprod >= 0, 0.0,
                  (1.0 - negative_slope) * (dotprod * inv))      # (tm, c_out)

    # Broadcast the correction across the 3 component groups once, then a single
    # slab-wide subtract and one lane-dense store of the whole output block.
    corr = jnp.concatenate([s * dc[0], s * dc[1], s * dc[2]], axis=1)  # (tm, 3*c_out)
    o_ref[...] = (q - corr).astype(o_ref.dtype)


def _block_diag3(w):
    """(c_in, k) -> (3*c_in, 3*k): block-diagonal replication over the 3 vector
    components, so a single MXU dot handles all three components at once."""
    c_in, k = w.shape
    out = jnp.zeros((3, c_in, 3, k), w.dtype)
    for c in range(3):
        out = out.at[c, :, c, :].set(w)
    return out.reshape(3 * c_in, 3 * k)


def _choose_tm(M, min_tile=512, max_tile=4096, target_blocks=8):
    """Row-tile heuristic: >=512-row tiles, ~8 blocks (>=4 per TensorCore on
    v7x), multiple-of-8 sublanes, and preferably a tile that divides M exactly
    so no pad / output-slice HBM passes are needed."""
    if M <= min_tile:
        return M                                    # single full block, no padding
    if M <= 2 * min_tile:
        if M % 16 == 0:
            return M // 2                           # two 8-aligned blocks (both TCs)
        return M
    tgt = max(min_tile, min(max_tile, M // target_blocks))
    tgt -= tgt % 8
    if M % 8 == 0:
        for t in range(tgt, 255, -8):               # prefer an exact divisor of M
            if M % t == 0:
                return t
        for t in range(tgt + 8, max_tile + 1, 8):
            if M % t == 0:
                return t
    return tgt                                      # rare fallback: pad ragged tail


def vnt_linear_leaky_relu(x, w_feat, w_dir, w_src, *, negative_slope=0.2, tm=None):
    """x: [B, N, 3, C_in] -> [B, N, 3, C_out] (VNTLinearLeakyReLU forward)."""
    B, N, three, c_in = x.shape
    assert three == 3
    c_out = w_feat.shape[1]
    M = B * N

    # Forward-time weight normalization (softmax over in_channels), fused into a
    # single block-diagonal matrix with d = softmax(w_dir) - softmax(w_src).
    wf = jax.nn.softmax(w_feat.astype(jnp.float32), axis=0)      # (c_in, c_out)
    wd = jax.nn.softmax(w_dir.astype(jnp.float32), axis=0)       # (c_in, 1)
    ws = jax.nn.softmax(w_src.astype(jnp.float32), axis=0)       # (c_in, 1)
    w_block = jnp.concatenate(
        [_block_diag3(wf), _block_diag3(wd - ws), _block_diag3(ws)], axis=1
    )                                                            # (3*c_in, 3*c_out + 6)

    if tm is None:
        tm = _choose_tm(M)
    assert tm == M or tm % 8 == 0, "row tile must be a multiple of 8 or equal M"
    num_blocks = pl.cdiv(M, tm)
    m_pad = num_blocks * tm

    # Free reshape: [B, N, 3, C_in] is contiguous -> (M, 3*C_in). The pad path is
    # only taken when no suitable divisor tile exists (never in typical shapes).
    x_flat = x.reshape(M, 3 * c_in)
    if m_pad != M:
        x_flat = jnp.pad(x_flat, ((0, m_pad - M), (0, 0)))

    out_flat = pl.pallas_call(
        functools.partial(_vnt_leaky_relu_kernel,
                          c_out=c_out, negative_slope=negative_slope),
        out_shape=jax.ShapeDtypeStruct((m_pad, 3 * c_out), x.dtype),
        grid=(num_blocks,),
        in_specs=[
            pl.BlockSpec((tm, 3 * c_in), lambda i: (i, 0)),
            pl.BlockSpec((3 * c_in, 3 * c_out + 6), lambda i: (0, 0)),
        ],
        out_specs=pl.BlockSpec((tm, 3 * c_out), lambda i: (i, 0)),
        compiler_params=pltpu.CompilerParams(dimension_semantics=("parallel",)),
    )(x_flat, w_block)

    if m_pad != M:
        out_flat = out_flat[:M]
    # Free reshape back to [B, N, 3, C_out].
    return out_flat.reshape(B, N, 3, c_out)


def reference(x, w_feat, w_dir, w_src, negative_slope=0.2):
    wf = jax.nn.softmax(w_feat, axis=0)
    wd = jax.nn.softmax(w_dir, axis=0)
    ws = jax.nn.softmax(w_src, axis=0)
    q = jnp.matmul(x, wf)
    k = jnp.matmul(x, wd)
    o = jnp.matmul(x, ws)
    ko = k - o
    qo = q - o
    dotprod = (ko * qo).sum(2, keepdims=True)
    d_norm_sq = (ko * ko).sum(2, keepdims=True)
    mask = (dotprod >= 0).astype(x.dtype)
    return negative_slope * q + (1 - negative_slope) * (
        mask * q + (1 - mask) * (q - dotprod / (d_norm_sq + EPS) * ko))


if __name__ == "__main__":
    key = jax.random.PRNGKey(0)
    k_x, k_wf, k_wd, k_ws = jax.random.split(key, 4)

    B, N, C_IN, C_OUT = 2, 64, 8, 16

    x = jax.random.normal(k_x, (B, N, 3, C_IN), dtype=jnp.float32)

    # Deterministic parameter init mirroring VNTLinear.__init__:
    # uniform[0,1) then softmax over dim=1 (out_channels).
    w_feat = jax.nn.softmax(jax.random.uniform(k_wf, (C_IN, C_OUT)), axis=1)
    w_dir = jax.nn.softmax(jax.random.uniform(k_wd, (C_IN, 1)), axis=1)
    w_src = jax.nn.softmax(jax.random.uniform(k_ws, (C_IN, 1)), axis=1)

    out = vnt_linear_leaky_relu(x, w_feat, w_dir, w_src, negative_slope=0.2)
    out = jax.block_until_ready(out)

    ref = reference(x, w_feat, w_dir, w_src, negative_slope=0.2)
    assert out.shape == (B, N, 3, C_OUT)
    assert jnp.allclose(out, ref, rtol=1e-5, atol=1e-5), "mismatch vs reference"

    print("KERNEL_OK")
</pallas_src>

<mosaic_0001>
module attributes {stable_mosaic.version = 11 : i64} {
  func.func @_vnt_leaky_relu_kernel(%arg0: i32, %arg1: memref<128x24xf32, #tpu.memory_space<vmem>>, %arg2: memref<24x54xf32, #tpu.memory_space<vmem>>, %arg3: memref<128x48xf32, #tpu.memory_space<vmem>>) attributes {dimension_semantics = [#tpu.dimension_semantics<parallel>], iteration_bounds = array<i64: 1>, scalar_prefetch = 0 : i64, scratch_operands = 0 : i64, tpu.core_type = #tpu.core_type<tc>, window_params = [{transform_indices = @transform_0, window_bounds = array<i64: 128, 24>}, {pipeline_mode = #tpu.pipeline_mode<synchronous>, transform_indices = @transform_1, window_bounds = array<i64: 24, 54>}, {transform_indices = @transform_2, window_bounds = array<i64: 128, 48>}]} {
    %c0 = arith.constant 0 : index
    %c0_0 = arith.constant 0 : index
    %0 = vector.load %arg1[%c0, %c0_0] : memref<128x24xf32, #tpu.memory_space<vmem>>, vector<128x24xf32>
    %c0_1 = arith.constant 0 : index
    %c0_2 = arith.constant 0 : index
    %1 = vector.load %arg2[%c0_1, %c0_2] : memref<24x54xf32, #tpu.memory_space<vmem>>, vector<24x54xf32>
    %cst = arith.constant dense<0.000000e+00> : vector<128x54xf32>
    %2 = tpu.matmul %0, %1, %cst {dimension_numbers = #tpu.dot_dimension_numbers<[1], [0], [0], [1], [0, 0, 1, 1], [], []>} : vector<128x24xf32>, vector<24x54xf32>, vector<128x54xf32> -> vector<128x54xf32>
    %3 = vector.extract_strided_slice %2 {offsets = [0, 0], sizes = [128, 48], strides = [1, 1]} : vector<128x54xf32> to vector<128x48xf32>
    %4 = vector.extract_strided_slice %2 {offsets = [0, 0], sizes = [128, 16], strides = [1, 1]} : vector<128x54xf32> to vector<128x16xf32>
    %5 = vector.extract_strided_slice %2 {offsets = [0, 16], sizes = [128, 16], strides = [1, 1]} : vector<128x54xf32> to vector<128x16xf32>
    %6 = vector.extract_strided_slice %2 {offsets = [0, 32], sizes = [128, 16], strides = [1, 1]} : vector<128x54xf32> to vector<128x16xf32>
    %7 = vector.extract_strided_slice %2 {offsets = [0, 48], sizes = [128, 1], strides = [1, 1]} : vector<128x54xf32> to vector<128x1xf32>
    %8 = vector.extract_strided_slice %2 {offsets = [0, 49], sizes = [128, 1], strides = [1, 1]} : vector<128x54xf32> to vector<128x1xf32>
    %9 = vector.extract_strided_slice %2 {offsets = [0, 50], sizes = [128, 1], strides = [1, 1]} : vector<128x54xf32> to vector<128x1xf32>
    %10 = vector.extract_strided_slice %2 {offsets = [0, 51], sizes = [128, 1], strides = [1, 1]} : vector<128x54xf32> to vector<128x1xf32>
    %11 = vector.extract_strided_slice %2 {offsets = [0, 52], sizes = [128, 1], strides = [1, 1]} : vector<128x54xf32> to vector<128x1xf32>
    %12 = vector.extract_strided_slice %2 {offsets = [0, 53], sizes = [128, 1], strides = [1, 1]} : vector<128x54xf32> to vector<128x1xf32>
    %13 = vector.broadcast %10 : vector<128x1xf32> to vector<128x16xf32>
    %14 = arith.subf %4, %13 : vector<128x16xf32>
    %15 = vector.broadcast %7 : vector<128x1xf32> to vector<128x16xf32>
    %16 = arith.mulf %15, %14 : vector<128x16xf32>
    %17 = vector.broadcast %11 : vector<128x1xf32> to vector<128x16xf32>
    %18 = arith.subf %5, %17 : vector<128x16xf32>
    %19 = vector.broadcast %8 : vector<128x1xf32> to vector<128x16xf32>
    %20 = arith.mulf %19, %18 : vector<128x16xf32>
    %21 = arith.addf %16, %20 : vector<128x16xf32>
    %22 = vector.broadcast %12 : vector<128x1xf32> to vector<128x16xf32>
    %23 = arith.subf %6, %22 : vector<128x16xf32>
    %24 = vector.broadcast %9 : vector<128x1xf32> to vector<128x16xf32>
    %25 = arith.mulf %24, %23 : vector<128x16xf32>
    %26 = arith.addf %21, %25 : vector<128x16xf32>
    %27 = arith.mulf %7, %7 : vector<128x1xf32>
    %28 = arith.mulf %8, %8 : vector<128x1xf32>
    %29 = arith.addf %27, %28 : vector<128x1xf32>
    %30 = arith.mulf %9, %9 : vector<128x1xf32>
    %31 = arith.addf %29, %30 : vector<128x1xf32>
    %cst_3 = arith.constant 9.99999997E-7 : f32
    %32 = vector.broadcast %cst_3 : f32 to vector<128x1xf32>
    %33 = arith.addf %31, %32 : vector<128x1xf32>
    %34 = tpu.reciprocal %33 : vector<128x1xf32> -> vector<128x1xf32>
    %cst_4 = arith.constant 0.000000e+00 : f32
    %35 = vector.broadcast %cst_4 : f32 to vector<128x16xf32>
    %36 = arith.cmpf oge, %26, %35 : vector<128x16xf32>
    %37 = vector.broadcast %34 : vector<128x1xf32> to vector<128x16xf32>
    %38 = arith.mulf %26, %37 : vector<128x16xf32>
    %cst_5 = arith.constant 8.000000e-01 : f32
    %39 = vector.broadcast %cst_5 : f32 to vector<128x16xf32>
    %40 = arith.mulf %39, %38 : vector<128x16xf32>
    %cst_6 = arith.constant 0.000000e+00 : f32
    %41 = vector.broadcast %cst_6 : f32 to vector<128x16xf32>
    %42 = arith.select %36, %41, %40 : vector<128x16xi1>, vector<128x16xf32>
    %43 = vector.broadcast %7 : vector<128x1xf32> to vector<128x16xf32>
    %44 = arith.mulf %42, %43 : vector<128x16xf32>
    %45 = vector.broadcast %8 : vector<128x1xf32> to vector<128x16xf32>
    %46 = arith.mulf %42, %45 : vector<128x16xf32>
    %47 = vector.broadcast %9 : vector<128x1xf32> to vector<128x16xf32>
    %48 = arith.mulf %42, %47 : vector<128x16xf32>
    %49 = tpu.concatenate %44, %46, %48 in 1 : vector<128x16xf32>, vector<128x16xf32>, vector<128x16xf32> -> vector<128x48xf32>
    %50 = arith.subf %3, %49 : vector<128x48xf32>
    %c0_7 = arith.constant 0 : index
    %c0_8 = arith.constant 0 : index
    %51 = vector.load %arg3[%c0_7, %c0_8] : memref<128x48xf32, #tpu.memory_space<vmem>>, vector<128x48xf32>
    tpu.vector_store %arg3[%c0_7, %c0_8], %50 {strides = array<i32>} : memref<128x48xf32, #tpu.memory_space<vmem>>, vector<128x48xf32>,
    return
  }
  func.func @transform_0(%arg0: i32) -> (i32, i32) {
    %c0_i32 = arith.constant 0 : i32
    %c0_i32_0 = arith.constant 0 : i32
    return %arg0, %c0_i32 : i32, i32
  }
  func.func @transform_1(%arg0: i32) -> (i32, i32) {
    %c0_i32 = arith.constant 0 : i32
    %c0_i32_0 = arith.constant 0 : i32
    %c0_i32_1 = arith.constant 0 : i32
    return %c0_i32, %c0_i32_0 : i32, i32
  }
  func.func @transform_2(%arg0: i32) -> (i32, i32) {
    %c0_i32 = arith.constant 0 : i32
    %c0_i32_0 = arith.constant 0 : i32
    return %arg0, %c0_i32 : i32, i32
  }
}

</mosaic_0001>

<bundles_post_ra>
// kernel: tpu_custom_call.1
= control target key start
LH: loop header
LB: loop body
LE: loop exit
PB: predicated region body
PF: predicated region fallthrough
CT: control target
= control target key end

     0   :  { %vm30_vm0 = vcmask 195584   ;;  %v2814_v2 = vmov 51   ;;  %v2807_v27 = vmov 48   ;;  %v2812_v32 = vmov 52   ;;  %s1651_s18 = smov 126   ;;  %s1652_s19 = smov 112   ;;  %s2804_s1 = inlined_call_operand.vmem [shape: f32[24,54], index: 1, kind: input, shape index: {}]   ;;  %s2805_s0 = inlined_call_operand.vmem [shape: f32[128,24], index: 0, kind: input, shape index: {}]   ;;  %s2806_s2 = inlined_call_operand.vmem [shape: f32[128,48], index: 2, kind: output, shape index: {}]  }
   0x1   :  { %v27_v0 = vld [vmem:[%s2804_s1] sm:$0xff]  ;;  %v28_v1 = vld [vmem:[%s2804_s1 + $0x8] sm:$0xff]  ;;  %1549 = vset.pattern.permute.xlu1 %v2814_v2  ;;  %1548 = vset.pattern.permute.xlu0 %v2814_v2  ;;  %v29_v6 = vld [vmem:[%s2804_s1 + $0x10] sm:$0xff]  ;;  %v2809_v33 = vmov 49   ;;  %v2810_v35 = vmov 53   ;;  %v2817_v37 = vmov 50  }
   0x2   :  { %v1528_v3 = vpack.c.bf16 %v28_v1, %v27_v0  ;;  %v11_v4 = vld [vmem:[%s2805_s0] sm:$0xff]  ;;  %v12_v7 = vld [vmem:[%s2805_s0 + $0x8] sm:$0xff]  ;;  %v13_v9 = vld [vmem:[%s2805_s0 + $0x10] sm:$0xff]  ;;  %s1653_s20 = smov 96   ;;  %s1654_s21 = smov 16  }
   0x3   :  { %v19_v5 = vld [vmem:[%s2805_s0 + $0x40] sm:$0xff]  ;;  %1504 = vmatprep.mubr.msk.f32.mxu0 %vm30_vm0, %v11_v4  ;;  %v20_v8 = vld [vmem:[%s2805_s0 + $0x48] sm:$0xff]  ;;  %v21_v10 = vld [vmem:[%s2805_s0 + $0x50] sm:$0xff]  ;;  %s1655_s22 = smov 32  }
   0x4   :  { %1516 = vmatprep.mubr.msk.f32.mxu1 %vm30_vm0, %v19_v5  ;;  %1529 = vmatprep.subr.bf16.mxu0 %v1528_v3  ;;  %v14_v11 = vld [vmem:[%s2805_s0 + $0x18] sm:$0xff]  ;;  %v15_v13 = vld [vmem:[%s2805_s0 + $0x20] sm:$0xff]  ;;  %v16_v15 = vld [vmem:[%s2805_s0 + $0x28] sm:$0xff] }
   0x5   :  { %1532 = vmatprep.subr.bf16.mxu1 %v1528_v3  ;;  %1531 = vmatpush3.bf16.msra.mxu0 %v1528_v3  ;;  %v22_v12 = vld [vmem:[%s2805_s0 + $0x58] sm:$0xff]  ;;  %v23_v14 = vld [vmem:[%s2805_s0 + $0x60] sm:$0xff]  ;;  %v24_v16 = vld [vmem:[%s2805_s0 + $0x68] sm:$0xff] }
   0x6   :  { %1534 = vmatpush3.bf16.msra.mxu1 %v1528_v3  ;;  %1502 = vmatprep.subr.mxu0 %v29_v6  ;;  %v17_v17 = vld [vmem:[%s2805_s0 + $0x30] sm:$0xff]  ;;  %v18_v19 = vld [vmem:[%s2805_s0 + $0x38] sm:$0xff] }
   0x7   :  { %1533 = vmatprep.subr.mxu1 %v29_v6  ;;  %v25_v18 = vld [vmem:[%s2805_s0 + $0x70] sm:$0xff]  ;;  %v26_v20 = vld [vmem:[%s2805_s0 + $0x78] sm:$0xff]  ;;  %s1650_s0 = smov 127  }
   0x9   :  { %1503 = vmatpush3.msra.mxu0 %v29_v6 }
   0xa   :  { %1535 = vmatpush3.msra.mxu1 %v29_v6  ;;  %1505 = vmatmul.mubr.msk.f32.vlgmr.msra.gmra.mrb[0].mxu0 %vm30_vm0, %v12_v7 }
   0xb   :  { %1517 = vmatmul.mubr.msk.f32.vlgmr.msra.gmra.mrb[0].mxu1 %vm30_vm0, %v20_v8  ;;  %1507 = vmatprep.mubr.msk.f32.mxu0 %vm30_vm0, %v13_v9 }
   0xc   :  { %1519 = vmatprep.mubr.msk.f32.mxu1 %vm30_vm0, %v21_v10 }
   0xe   :  { %1508 = vmatmul.mubr.msk.f32.gmra.mrb[2].mxu0 %vm30_vm0, %v14_v11 }
   0xf   :  { %1520 = vmatmul.mubr.msk.f32.gmra.mrb[2].mxu1 %vm30_vm0, %v22_v12  ;;  %1510 = vmatprep.mubr.msk.f32.mxu0 %vm30_vm0, %v15_v13 }
  0x10   :  { %1522 = vmatprep.mubr.msk.f32.mxu1 %vm30_vm0, %v23_v14 }
  0x12   :  { %1511 = vmatmul.mubr.msk.f32.gmra.mrb[4].mxu0 %vm30_vm0, %v16_v15 }
  0x13   :  { %1523 = vmatmul.mubr.msk.f32.gmra.mrb[4].mxu1 %vm30_vm0, %v24_v16  ;;  %1513 = vmatprep.mubr.msk.f32.mxu0 %vm30_vm0, %v17_v17 }
  0x14   :  { %1525 = vmatprep.mubr.msk.f32.mxu1 %vm30_vm0, %v25_v18 }
  0x16   :  { %1514 = vmatmul.mubr.msk.f32.gmra.mrb[6].mxu0 %vm30_vm0, %v18_v19 }
  0x17   :  { %1526 = vmatmul.mubr.msk.f32.gmra.mrb[6].mxu1 %vm30_vm0, %v26_v20 }
  0xdd   :  { %v1746_v21 = vpop.f32.mrb[0].mxu0 }
  0xde   :  { %2892 = vst [vmem:[#allocation2_spill] sm:$0xff] %v1746_v21  ;;  %v1748_v22 = vpop.f32.mrb[0].mxu1  ;;  %231 = vperm.xlu0 %1548, %v1746_v21   ;;  %v1754_v24 = vpop.f32.mrb[1].mxu0  ;;  %v1834_v42 = vmul.f32 %v1746_v21, %v1746_v21 }
  0xdf   :  { %2893 = vst [vmem:[#allocation3_spill] sm:$0xff] %v1748_v22  ;;  %271 = vperm.xlu1 %1549, %v1748_v22   ;;  %v1751_v23 = vpop.f32.mrb[1].mxu1  ;;  %2895 = vst [vmem:[#allocation5_spill] sm:$0xff] %v1754_v24  ;;  %v1813_v38 = vmul.f32 %v1754_v24, %v1754_v24  ;;  %v1843_v43 = vmul.f32 %v1748_v22, %v1748_v22 }
  0xe0   :  { %2894 = vst [vmem:[#allocation4_spill] sm:$0xff] %v1751_v23  ;;  %v1822_v39 = vmul.f32 %v1751_v23, %v1751_v23 }
  0xe1   :  { %v1756_v25 = vpop.f32.mrb[2].mxu0 }
  0xe2   :  { %2896 = vst [vmem:[#allocation6_spill] sm:$0xff] %v1756_v25  ;;  %v1758_v26 = vpop.f32.mrb[2].mxu1  ;;  %1551 = vset.pattern.permute.xlu0 %v2807_v27  ;;  %v1762_v28 = vpop.f32.mrb[3].mxu0  ;;  %v1886_v46 = vmul.f32 %v1756_v25, %v1756_v25 }
  0xe3   :  { %1550 = vset.pattern.permute.xlu1 %v2807_v27  ;;  %2897 = vst [vmem:[#allocation7_spill] sm:$0xff] %v1762_v28  ;;  %v1764_v29 = vpop.f32.mrb[3].mxu1  ;;  %357 = vperm.xlu0 %1551, %v1748_v22   ;;  %v1894_v47 = vmul.f32 %v1758_v26, %v1758_v26  ;;  %v1916_v52 = vmul.f32 %v1762_v28, %v1762_v28 }
  0xe4   :  { %2898 = vst [vmem:[#allocation8_spill] sm:$0xff] %v1764_v29  ;;  %325 = vperm.xlu1 %1550, %v1746_v21   ;;  %v1924_v53 = vmul.f32 %v1764_v29, %v1764_v29 }
  0xe5   :  { %v1768_v30 = vpop.f32.mrb[4].mxu0 }
  0xe6   :  { %2899 = vst [vmem:[#allocation9_spill] sm:$0xff] %v1768_v30  ;;  %v1770_v31 = vpop.f32.mrb[4].mxu1  ;;  %v1780_v34 = vpop.f32.mrb[5].mxu0  ;;  %v1987_v7 = vmul.f32 %v1768_v30, %v1768_v30 }
  0xe7   :  { %2900 = vst [vmem:[#allocation10_spill] sm:$0xff] %v1770_v31  ;;  %1552 = vset.pattern.permute.xlu0 %v2812_v32  ;;  %2901 = vst [vmem:[#allocation11_spill] sm:$0xff] %v1780_v34  ;;  %v1786_v36 = vpop.f32.mrb[5].mxu1  ;;  %v1999_v10 = vmul.f32 %v1770_v31, %v1770_v31  ;;  %v2033_v20 = vmul.f32 %v1780_v34, %v1780_v34 }
  0xe8   :  { %1553 = vset.pattern.permute.xlu1 %v2812_v32  ;;  %405 = vperm.xlu0 %1552, %v1746_v21   ;;  %2902 = vst [vmem:[#allocation12_spill] sm:$0xff] %v1786_v36  ;;  %2920 = vst [vmem:[#allocation30_spill] sm:$0xff] %v1987_v7 }
  0xe9   :  { %437 = vperm.xlu1 %1553, %v1748_v22   ;;  %v1824_v40 = vpop.f32.mrb[6].mxu0  ;;  %2923 = vst [vmem:[#allocation33_spill] sm:$0xff] %v1999_v10  ;;  %2927 = vst [vmem:[#allocation37_spill] sm:$0xff] %v2033_v20 }
  0xea   :  { %2903 = vst [vmem:[#allocation13_spill] sm:$0xff] %v1824_v40  ;;  %v1830_v41 = vpop.f32.mrb[6].mxu1  ;;  %v1854_v44 = vpop.f32.mrb[7].mxu0 }
  0xeb   :  { %2904 = vst [vmem:[#allocation14_spill] sm:$0xff] %v1830_v41  ;;  %2905 = vst [vmem:[#allocation15_spill] sm:$0xff] %v1854_v44  ;;  %v1858_v45 = vpop.f32.mrb[7].mxu1 }
  0xec   :  { %1555 = vset.pattern.permute.xlu0 %v2809_v33  ;;  %2906 = vst [vmem:[#allocation16_spill] sm:$0xff] %v1858_v45 }
  0xed   :  { %1554 = vset.pattern.permute.xlu1 %v2809_v33  ;;  %517 = vperm.xlu0 %1555, %v1748_v22  }
  0xee   :  { %485 = vperm.xlu1 %1554, %v1746_v21  }
  0xf1   :  { %1556 = vset.pattern.permute.xlu0 %v2810_v35 }
  0xf2   :  { %1557 = vset.pattern.permute.xlu1 %v2810_v35  ;;  %645 = vperm.xlu0 %1556, %v1746_v21  }
  0xf3   :  { %677 = vperm.xlu1 %1557, %v1748_v22  }
  0xf6   :  { %1559 = vset.pattern.permute.xlu0 %v2817_v37 }
  0xf7   :  { %1558 = vset.pattern.permute.xlu1 %v2817_v37  ;;  %757 = vperm.xlu0 %1559, %v1748_v22  }
  0xf8   :  { %725 = vperm.xlu1 %1558, %v1746_v21  }
  0xfb   :  { %1560 = vset.pattern.permute.xlu0 %v2814_v2 }
  0xfc   :  { %1562 = vset.pattern.permute.xlu1 %v2807_v27  ;;  %226 = vperm.xlu0 %1560, %v1754_v24  }
  0xfd   :  { %353 = vperm.xlu1 %1562, %v1751_v23  }
 0x100   :  { %266 = vperm.xlu0 %1560, %v1751_v23  }
 0x101   :  { %1563 = vset.pattern.permute.xlu1 %v2812_v32 }
 0x102   :  { %401 = vperm.xlu1 %1563, %v1754_v24  }
 0x104   :  { %1561 = vset.pattern.permute.xlu0 %v2807_v27 }
 0x105   :  { %321 = vperm.xlu0 %1561, %v1754_v24  }
 0x106   :  { %1566 = vset.pattern.permute.xlu1 %v2809_v33 }
 0x107   :  { %513 = vperm.xlu1 %1566, %v1751_v23  }
 0x109   :  { %1564 = vset.pattern.permute.xlu0 %v2812_v32 }
 0x10a   :  { %433 = vperm.xlu0 %1564, %v1751_v23  }
 0x10b   :  { %1567 = vset.pattern.permute.xlu1 %v2810_v35 }
 0x10c   :  { %641 = vperm.xlu1 %1567, %v1754_v24  }
 0x10e   :  { %1565 = vset.pattern.permute.xlu0 %v2809_v33 }
 0x10f   :  { %481 = vperm.xlu0 %1565, %v1754_v24  }
 0x110   :  { %1570 = vset.pattern.permute.xlu1 %v2817_v37 }
 0x111   :  { %753 = vperm.xlu1 %1570, %v1751_v23  }
 0x113   :  { %1568 = vset.pattern.permute.xlu0 %v2810_v35 }
 0x114   :  { %673 = vperm.xlu0 %1568, %v1751_v23  }
 0x115   :  { %912 = vrot.lane.b32.xlu1 %v1813_v38, %s1650_s0 }
 0x116   :  { %1571 = vset.pattern.permute.xlu1 %v2814_v2 }
 0x118   :  { %1569 = vset.pattern.permute.xlu0 %v2817_v37 }
 0x119   :  { %928 = vrot.lane.b32.xlu1 %v1822_v39, %s1650_s0  ;;  %721 = vperm.xlu0 %1569, %v1754_v24  }
 0x11d   :  { %976 = vrot.lane.b32.xlu1 %v1813_v38, %s1651_s18  ;;  %914 = vrot.lane.b32.xlu0 %v1834_v42, %s1650_s0 }
 0x11e   :  { %1572 = vset.pattern.permute.xlu0 %v2807_v27 }
 0x121   :  { %241 = vperm.xlu1 %1571, %v1756_v25   ;;  %930 = vrot.lane.b32.xlu0 %v1843_v43, %s1650_s0 }
 0x125   :  { %281 = vperm.xlu1 %1571, %v1758_v26   ;;  %978 = vrot.lane.b32.xlu0 %v1834_v42, %s1651_s18 }
 0x129   :  { %1573 = vset.pattern.permute.xlu1 %v2812_v32  ;;  %333 = vperm.xlu0 %1572, %v1756_v25  }
 0x12a   :  { %413 = vperm.xlu1 %1573, %v1756_v25  }
 0x12d   :  { %365 = vperm.xlu0 %1572, %v1758_v26  }
 0x12e   :  { %445 = vperm.xlu1 %1573, %v1758_v26  }
 0x131   :  { %1574 = vset.pattern.permute.xlu0 %v2809_v33 }
 0x132   :  { %1575 = vset.pattern.permute.xlu1 %v2810_v35  ;;  %493 = vperm.xlu0 %1574, %v1756_v25  }
 0x133   :  { %653 = vperm.xlu1 %1575, %v1756_v25  }
 0x136   :  { %525 = vperm.xlu0 %1574, %v1758_v26  }
 0x137   :  { %685 = vperm.xlu1 %1575, %v1758_v26  }
 0x13a   :  { %1576 = vset.pattern.permute.xlu0 %v2817_v37 }
 0x13b   :  { %1577 = vset.pattern.permute.xlu1 %v2814_v2  ;;  %733 = vperm.xlu0 %1576, %v1756_v25  }
 0x13c   :  { %236 = vperm.xlu1 %1577, %v1762_v28  }
 0x13f   :  { %765 = vperm.xlu0 %1576, %v1758_v26  }
 0x140   :  { %1579 = vset.pattern.permute.xlu1 %v2807_v27 }
 0x141   :  { %329 = vperm.xlu1 %1579, %v1762_v28  }
 0x143   :  { %1578 = vset.pattern.permute.xlu0 %v2814_v2 }
 0x144   :  { %276 = vperm.xlu0 %1578, %v1764_v29  }
 0x145   :  { %361 = vperm.xlu1 %1579, %v1764_v29  }
 0x148   :  { %1581 = vset.pattern.permute.xlu0 %v2812_v32 }
 0x149   :  { %1580 = vset.pattern.permute.xlu1 %v2812_v32  ;;  %441 = vperm.xlu0 %1581, %v1764_v29  }
 0x14a   :  { %409 = vperm.xlu1 %1580, %v1762_v28  }
 0x14d   :  { %1584 = vset.pattern.permute.xlu0 %v2810_v35 }
 0x14e   :  { %1582 = vset.pattern.permute.xlu1 %v2809_v33  ;;  %681 = vperm.xlu0 %1584, %v1764_v29  }
 0x14f   :  { %489 = vperm.xlu1 %1582, %v1762_v28  }
 0x152   :  { %918 = vrot.lane.b32.xlu0 %v1886_v46, %s1650_s0 }
 0x153   :  { %521 = vperm.xlu1 %1582, %v1764_v29   ;;  %1587 = vset.pattern.permute.xlu0 %v2807_v27 }
 0x156   :  { %934 = vrot.lane.b32.xlu0 %v1894_v47, %s1650_s0 }
 0x157   :  { %1583 = vset.pattern.permute.xlu1 %v2810_v35 }
 0x158   :  { %649 = vperm.xlu1 %1583, %v1762_v28  }
 0x15a   :  { %341 = vperm.xlu0 %1587, %v1768_v30  }
 0x15c   :  { %1585 = vset.pattern.permute.xlu1 %v2817_v37 }
 0x15d   :  { %729 = vperm.xlu1 %1585, %v1762_v28   ;;  %v1905_v49 = vpop.permute.xlu0 %231 }
 0x15e   :  { %v1903_v48 = vpop.permute.xlu1 %271  ;;  %2908 = vst [vmem:[#allocation18_spill] sm:$0xff] %v1905_v49  ;;  %373 = vperm.xlu0 %1587, %v1770_v31  }
 0x15f   :  { %2907 = vst [vmem:[#allocation17_spill] sm:$0xff] %v1903_v48 }
 0x161   :  { %761 = vperm.xlu1 %1585, %v1764_v29  }
 0x162   :  { %v1911_v51 = vpop.permute.xlu0 %357  ;;  %1589 = vset.pattern.permute.xlu0 %v2809_v33 }
 0x163   :  { %v1909_v50 = vpop.permute.xlu1 %325  ;;  %2910 = vst [vmem:[#allocation20_spill] sm:$0xff] %v1911_v51  ;;  %501 = vperm.xlu0 %1589, %v1768_v30   ;;  %v2933_v51 = vmov 53  }
 0x164   :  { %2909 = vst [vmem:[#allocation19_spill] sm:$0xff] %v1909_v50 }
 0x165   :  { %916 = vrot.lane.b32.xlu1 %v1916_v52, %s1650_s0 }
 0x166   :  { %1586 = vset.pattern.permute.xlu1 %v2814_v2 }
 0x167   :  { %v1928_v55 = vpop.permute.xlu0 %405  ;;  %533 = vperm.xlu0 %1589, %v1770_v31  }
 0x168   :  { %v1926_v54 = vpop.permute.xlu1 %437 }
 0x169   :  { %932 = vrot.lane.b32.xlu1 %v1924_v53, %s1650_s0 }
 0x16b   :  { %1591 = vset.pattern.permute.xlu0 %v2817_v37 }
 0x16c   :  { %v1936_v57 = vpop.permute.xlu0 %517  ;;  %741 = vperm.xlu0 %1591, %v1768_v30  }
 0x16d   :  { %v1934_v56 = vpop.permute.xlu1 %485  ;;  %2912 = vst [vmem:[#allocation22_spill] sm:$0xff] %v1936_v57  ;;  %980 = vrot.lane.b32.xlu1 %v1916_v52, %s1651_s18 }
 0x16e   :  { %2911 = vst [vmem:[#allocation21_spill] sm:$0xff] %v1934_v56 }
 0x170   :  { %773 = vperm.xlu0 %1591, %v1770_v31  }
 0x171   :  { %251 = vperm.xlu1 %1586, %v1768_v30   ;;  %v1945_v59 = vpop.permute.xlu0 %645 }
 0x172   :  { %v1943_v58 = vpop.permute.xlu1 %677 }
 0x174   :  { %1592 = vset.pattern.permute.xlu0 %v2814_v2 }
 0x175   :  { %291 = vperm.xlu1 %1586, %v1770_v31   ;;  %246 = vperm.xlu0 %1592, %v1780_v34  }
 0x176   :  { %v1952_v61 = vpop.permute.xlu0 %757 }
 0x177   :  { %v1950_v60 = vpop.permute.xlu1 %725  ;;  %2914 = vst [vmem:[#allocation24_spill] sm:$0xff] %v1952_v61 }
 0x178   :  { %2913 = vst [vmem:[#allocation23_spill] sm:$0xff] %v1950_v60 }
 0x179   :  { %1588 = vset.pattern.permute.xlu1 %v2812_v32  ;;  %286 = vperm.xlu0 %1592, %v1786_v36  }
 0x17a   :  { %421 = vperm.xlu1 %1588, %v1768_v30  }
 0x17b   :  { %v1959_v63 = vpop.permute.xlu0 %226 }
 0x17c   :  { %v1957_v62 = vpop.permute.xlu1 %353  ;;  %2916 = vst [vmem:[#allocation26_spill] sm:$0xff] %v1959_v63 }
 0x17d   :  { %2915 = vst [vmem:[#allocation25_spill] sm:$0xff] %v1957_v62  ;;  %1594 = vset.pattern.permute.xlu0 %v2812_v32  ;;  %v2930_v62 = vmov 51  }
 0x17e   :  { %453 = vperm.xlu1 %1588, %v1770_v31   ;;  %417 = vperm.xlu0 %1594, %v1780_v34  }
 0x17f   :  { %v1964_v0 = vpop.permute.xlu0 %266 }
 0x180   :  { %2917 = vst [vmem:[#allocation27_spill] sm:$0xff] %v1964_v0 }
 0x181   :  { %v1966_v1 = vpop.permute.xlu1 %401 }
 0x182   :  { %1590 = vset.pattern.permute.xlu1 %v2810_v35  ;;  %449 = vperm.xlu0 %1594, %v1786_v36  }
 0x183   :  { %661 = vperm.xlu1 %1590, %v1768_v30  }
 0x184   :  { %v1971_v3 = vpop.permute.xlu0 %321 }
 0x185   :  { %2918 = vst [vmem:[#allocation28_spill] sm:$0xff] %v1971_v3 }
 0x186   :  { %v1973_v4 = vpop.permute.xlu1 %513  ;;  %1596 = vset.pattern.permute.xlu0 %v2810_v35 }
 0x187   :  { %2919 = vst [vmem:[#allocation29_spill] sm:$0xff] %v1973_v4  ;;  %693 = vperm.xlu1 %1590, %v1770_v31   ;;  %657 = vperm.xlu0 %1596, %v1780_v34  }
 0x189   :  { %v1978_v5 = vpop.permute.xlu0 %433 }
 0x18b   :  { %v1980_v6 = vpop.permute.xlu1 %641  ;;  %1593 = vset.pattern.permute.xlu1 %v2807_v27  ;;  %689 = vperm.xlu0 %1596, %v1786_v36  }
 0x18c   :  { %337 = vperm.xlu1 %1593, %v1780_v34  }
 0x18e   :  { %v1989_v8 = vpop.permute.xlu0 %481 }
 0x18f   :  { %2921 = vst [vmem:[#allocation31_spill] sm:$0xff] %v1989_v8  ;;  %922 = vrot.lane.b32.xlu0 %v1987_v7, %s1650_s0 }
 0x190   :  { %v1991_v9 = vpop.permute.xlu1 %753  ;;  %369 = vperm.xlu1 %1593, %v1786_v36   ;;  %1599 = vset.pattern.permute.xlu0 %v2807_v27 }
 0x191   :  { %2922 = vst [vmem:[#allocation32_spill] sm:$0xff] %v1991_v9 }
 0x193   :  { %v2001_v11 = vpop.permute.xlu0 %673  ;;  %938 = vrot.lane.b32.xlu0 %v1999_v10, %s1650_s0 }
 0x194   :  { %v2003_v12 = vpop.permute.xlu1 %912  ;;  %1595 = vset.pattern.permute.xlu1 %v2809_v33 }
 0x195   :  { %497 = vperm.xlu1 %1595, %v1780_v34  }
 0x197   :  { %349 = vperm.xlu0 %1599, %v1824_v40  }
 0x198   :  { %v2009_v13 = vpop.permute.xlu1 %928  ;;  %v2012_v14 = vpop.permute.xlu0 %721 }
 0x199   :  { %2924 = vst [vmem:[#allocation34_spill] sm:$0xff] %v2012_v14  ;;  %529 = vperm.xlu1 %1595, %v1786_v36  }
 0x19b   :  { %381 = vperm.xlu0 %1599, %v1830_v41  }
 0x19c   :  { %v2015_v15 = vpop.permute.xlu1 %976  ;;  %v2018_v16 = vpop.permute.xlu0 %914 }
 0x19d   :  { %1597 = vset.pattern.permute.xlu1 %v2817_v37 }
 0x19e   :  { %737 = vperm.xlu1 %1597, %v1780_v34   ;;  %v2941_v34 = vmov 49  }
 0x19f   :  { %1601 = vset.pattern.permute.xlu0 %v2809_v33  ;;  %v2043_v33 = vmul.f32 %v1786_v36, %v1786_v36 }
 0x1a0   :  { %v2022_v17 = vpop.permute.xlu1 %241  ;;  %v2025_v18 = vpop.permute.xlu0 %930  ;;  %509 = vperm.xlu0 %1601, %v1824_v40  }
 0x1a1   :  { %2925 = vst [vmem:[#allocation35_spill] sm:$0xff] %v2022_v17 }
 0x1a2   :  { %769 = vperm.xlu1 %1597, %v1786_v36  }
 0x1a4   :  { %v2029_v19 = vpop.permute.xlu1 %281  ;;  %v2035_v27 = vpop.permute.xlu0 %978  ;;  %541 = vperm.xlu0 %1601, %v1830_v41  }
 0x1a5   :  { %2926 = vst [vmem:[#allocation36_spill] sm:$0xff] %v2029_v19 }
 0x1a6   :  { %920 = vrot.lane.b32.xlu1 %v2033_v20, %s1650_s0 }
 0x1a7   :  { %1598 = vset.pattern.permute.xlu1 %v2814_v2 }
 0x1a8   :  { %v2045_v35 = vpop.permute.xlu0 %333  ;;  %1603 = vset.pattern.permute.xlu0 %v2817_v37 }
 0x1a9   :  { %2928 = vst [vmem:[#allocation38_spill] sm:$0xff] %v2045_v35  ;;  %v2047_v32 = vpop.permute.xlu1 %413  ;;  %749 = vperm.xlu0 %1603, %v1824_v40  }
 0x1aa   :  { %936 = vrot.lane.b32.xlu1 %v2043_v33, %s1650_s0 }
 0x1ac   :  { %v2053_v19 = vpop.permute.xlu0 %365 }
 0x1ad   :  { %2929 = vst [vmem:[#allocation39_spill] sm:$0xff] %v2053_v19  ;;  %v2055_v17 = vpop.permute.xlu1 %445  ;;  %781 = vperm.xlu0 %1603, %v1830_v41   ;;  %v2931_v19 = vmov 52  }
 0x1ae   :  { %261 = vperm.xlu1 %1598, %v1824_v40  }
 0x1b1   :  { %v2059_v2 = vpop.permute.xlu0 %493  ;;  %1604 = vset.pattern.permute.xlu0 %v2930_v62 }
 0x1b2   :  { %v2061_v35 = vpop.permute.xlu1 %653  ;;  %301 = vperm.xlu1 %1598, %v1830_v41   ;;  %256 = vperm.xlu0 %1604, %v1854_v44  }
 0x1b5   :  { %v2066_v37 = vpop.permute.xlu0 %525 }
 0x1b6   :  { %v2068_v0 = vpop.permute.xlu1 %685  ;;  %1600 = vset.pattern.permute.xlu1 %v2931_v19  ;;  %296 = vperm.xlu0 %1604, %v1858_v45  }
 0x1b7   :  { %429 = vperm.xlu1 %1600, %v1824_v40  }
 0x1ba   :  { %v2073_v3 = vpop.permute.xlu0 %733  ;;  %1606 = vset.pattern.permute.xlu0 %v2931_v19  ;;  %v2937_v19 = vmov 48  }
 0x1bb   :  { %v2075_v63 = vpop.permute.xlu1 %236  ;;  %461 = vperm.xlu1 %1600, %v1830_v41   ;;  %425 = vperm.xlu0 %1606, %v1854_v44  }
 0x1bc   :  { %2932 = vst [vmem:[#allocation40_spill] sm:$0xff] %v2075_v63 }
 0x1be   :  { %v2080_v62 = vpop.permute.xlu0 %765 }
 0x1bf   :  { %1602 = vset.pattern.permute.xlu1 %v2933_v51  ;;  %457 = vperm.xlu0 %1606, %v1858_v45  }
 0x1c0   :  { %v2083_v48 = vpop.permute.xlu1 %329  ;;  %669 = vperm.xlu1 %1602, %v1824_v40  }
 0x1c1   :  { %2934 = vst [vmem:[#allocation41_spill] sm:$0xff] %v2083_v48  ;;  %v2103_v48 = vmul.f32 %v1824_v40, %v1824_v40 }
 0x1c3   :  { %v2087_v50 = vpop.permute.xlu0 %276  ;;  %1608 = vset.pattern.permute.xlu0 %v2933_v51 }
 0x1c4   :  { %2935 = vst [vmem:[#allocation42_spill] sm:$0xff] %v2087_v50  ;;  %v2089_v49 = vpop.permute.xlu1 %361  ;;  %701 = vperm.xlu1 %1602, %v1830_v41   ;;  %665 = vperm.xlu0 %1608, %v1854_v44   ;;  %v2115_v50 = vmul.f32 %v1830_v41, %v1830_v41 }
 0x1c5   :  { %2936 = vst [vmem:[#allocation43_spill] sm:$0xff] %v2089_v49 }
 0x1c6   :  { %2940 = vst [vmem:[#allocation46_spill] sm:$0xff] %v2115_v50 }
 0x1c8   :  { %1605 = vset.pattern.permute.xlu1 %v2937_v19  ;;  %v2095_v63 = vpop.permute.xlu0 %441  ;;  %697 = vperm.xlu0 %1608, %v1858_v45  }
 0x1c9   :  { %2938 = vst [vmem:[#allocation44_spill] sm:$0xff] %v2095_v63  ;;  %v2097_v36 = vpop.permute.xlu1 %409  ;;  %345 = vperm.xlu1 %1605, %v1854_v44  }
 0x1cc   :  { %926 = vrot.lane.b32.xlu0 %v2103_v48, %s1650_s0 }
 0x1cd   :  { %377 = vperm.xlu1 %1605, %v1858_v45   ;;  %v2108_v51 = vpop.permute.xlu0 %681  ;;  %1611 = vset.pattern.permute.xlu0 %v2937_v19 }
 0x1ce   :  { %2939 = vst [vmem:[#allocation45_spill] sm:$0xff] %v2108_v51  ;;  %v2110_v49 = vpop.permute.xlu1 %489 }
 0x1d0   :  { %942 = vrot.lane.b32.xlu0 %v2115_v50, %s1650_s0 }
 0x1d1   :  { %1607 = vset.pattern.permute.xlu1 %v2941_v34  ;;  %v2120_v40 = vpop.permute.xlu0 %918  ;;  %v2944_v34 = vmov 50  }
 0x1d2   :  { %v2122_v31 = vpop.permute.xlu1 %521  ;;  %505 = vperm.xlu1 %1607, %v1854_v44  }
 0x1d3   :  { %2942 = vst [vmem:[#allocation47_spill] sm:$0xff] %v2122_v31 }
 0x1d4   :  { %982 = vrot.lane.b32.xlu0 %v1886_v46, %s1651_s18 }
 0x1d5   :  { %v2127_v51 = vpop.permute.xlu0 %934 }
 0x1d6   :  { %537 = vperm.xlu1 %1607, %v1858_v45  }
 0x1d7   :  { %v2130_v41 = vpop.permute.xlu1 %649 }
 0x1d8   :  { %2943 = vst [vmem:[#allocation48_spill] sm:$0xff] %v2130_v41  ;;  %986 = vrot.lane.b32.xlu0 %v1987_v7, %s1651_s18  ;;  %v465_v41 = vsub.f32 %v1746_v21, %v1928_v55 }
 0x1d9   :  { %v2135_v30 = vpop.permute.xlu0 %341 }
 0x1da   :  { %1609 = vset.pattern.permute.xlu1 %v2944_v34  ;;  %2945 = vst [vmem:[#allocation49_spill] sm:$0xff] %v2135_v30  ;;  %v2151_v34 = vmul.f32 %v1854_v44, %v1854_v44 }
 0x1db   :  { %745 = vperm.xlu1 %1609, %v1854_v44  }
 0x1dc   :  { %v2138_v31 = vpop.permute.xlu1 %729  ;;  %990 = vrot.lane.b32.xlu0 %v2103_v48, %s1651_s18 }
 0x1dd   :  { %2946 = vst [vmem:[#allocation50_spill] sm:$0xff] %v2138_v31  ;;  %v2142_v29 = vpop.permute.xlu0 %373 }
 0x1de   :  { %2947 = vst [vmem:[#allocation51_spill] sm:$0xff] %v2142_v29  ;;  %v2164_v29 = vmul.f32 %v1858_v45, %v1858_v45 }
 0x1df   :  { %777 = vperm.xlu1 %1609, %v1858_v45  }
 0x1e0   :  { %v2145_v63 = vpop.permute.xlu1 %761  ;;  %994 = vrot.lane.b32.xlu0 %v1843_v43, %s1651_s18  ;;  %2950 = vst [vmem:[#allocation54_spill] sm:$0xff] %v2164_v29 }
 0x1e1   :  { %2948 = vst [vmem:[#allocation52_spill] sm:$0xff] %v2145_v63 }
 0x1e2   :  { %v2155_v30 = vpop.permute.xlu0 %501 }
 0x1e3   :  { %924 = vrot.lane.b32.xlu1 %v2151_v34, %s1650_s0  ;;  %2949 = vst [vmem:[#allocation53_spill] sm:$0xff] %v2155_v30 }
 0x1e4   :  { %v2157_v31 = vpop.permute.xlu1 %916  ;;  %1610 = vset.pattern.permute.xlu1 %v2937_v19  ;;  %998 = vrot.lane.b32.xlu0 %v1894_v47, %s1651_s18 }
 0x1e6   :  { %v2168_v44 = vpop.permute.xlu0 %533 }
 0x1e7   :  { %940 = vrot.lane.b32.xlu1 %v2164_v29, %s1650_s0  ;;  %2951 = vst [vmem:[#allocation55_spill] sm:$0xff] %v2168_v44  ;;  %v545_v44 = vmul.f32 %v1934_v56, %v465_v41  ;;  %v705_v41 = vsub.f32 %v1746_v21, %v1945_v59 }
 0x1e8   :  { %v2170_v63 = vpop.permute.xlu1 %932  ;;  %1002 = vrot.lane.b32.xlu0 %v1999_v10, %s1651_s18 }
 0x1eb   :  { %984 = vrot.lane.b32.xlu1 %v2033_v20, %s1651_s18  ;;  %v2178_v30 = vpop.permute.xlu0 %741  ;;  %v473_v20 = vsub.f32 %v1748_v22, %v1926_v54 }
 0x1ec   :  { %v2176_v19 = vpop.permute.xlu1 %980  ;;  %1006 = vrot.lane.b32.xlu0 %v2115_v50, %s1651_s18 }
 0x1ed   :  { %v553_v55 = vmul.f32 %v1936_v57, %v473_v20 }
 0x1ef   :  { %988 = vrot.lane.b32.xlu1 %v2151_v34, %s1651_s18  ;;  %v2189_v10 = vpop.permute.xlu0 %773 }
 0x1f0   :  { %v2187_v7 = vpop.permute.xlu1 %251  ;;  %2953 = vst [vmem:[#allocation57_spill] sm:$0xff] %v2189_v10  ;;  %578 = vrot.lane.b32.xlu0 %v545_v44, %s1652_s19  ;;  %v713_v44 = vsub.f32 %v1748_v22, %v1943_v58 }
 0x1f1   :  { %2952 = vst [vmem:[#allocation56_spill] sm:$0xff] %v2187_v7  ;;  %v785_v7 = vmul.f32 %v1950_v60, %v705_v41  ;;  %v961_v41 = vadd.f32 %v2018_v16, %v1834_v42 }
 0x1f2   :  { %v793_v59 = vmul.f32 %v1952_v61, %v713_v44  ;;  %v472_v44 = vsub.f32 %v1751_v23, %v1978_v5  ;;  %v704_v61 = vsub.f32 %v1754_v24, %v1980_v6 }
 0x1f3   :  { %992 = vrot.lane.b32.xlu1 %v1822_v39, %s1651_s18 }
 0x1f4   :  { %v2197_v50 = vpop.permute.xlu1 %291  ;;  %v2201_v56 = vpop.permute.xlu0 %246  ;;  %594 = vrot.lane.b32.xlu0 %v553_v55, %s1652_s19  ;;  %v552_v16 = vmul.f32 %v1973_v4, %v472_v44  ;;  %v784_v5 = vmul.f32 %v2012_v14, %v704_v61 }
 0x1f5   :  { %2954 = vst [vmem:[#allocation58_spill] sm:$0xff] %v2197_v50  ;;  %2955 = vst [vmem:[#allocation59_spill] sm:$0xff] %v2201_v56  ;;  %v464_v50 = vsub.f32 %v1754_v24, %v1966_v1 }
 0x1f7   :  { %996 = vrot.lane.b32.xlu1 %v1924_v53, %s1651_s18 }
 0x1f8   :  { %v2211_v20 = vpop.permute.xlu0 %286  ;;  %818 = vrot.lane.b32.xlu0 %v785_v7, %s1653_s20  ;;  %v1025_v7 = vadd.f32 %v2035_v27, %v961_v41 }
 0x1f9   :  { %v2209_v54 = vpop.permute.xlu1 %421  ;;  %2956 = vst [vmem:[#allocation60_spill] sm:$0xff] %v2211_v20  ;;  %v544_v20 = vmul.f32 %v1989_v8, %v464_v50  ;;  %v712_v50 = vsub.f32 %v1751_v23, %v2001_v11 }
 0x1fa   :  { %v1041_v42 = vadd.f32 1e-06, %v1025_v7 }
 0x1fb   :  { %1000 = vrot.lane.b32.xlu1 %v2043_v33, %s1651_s18  ;;  %v792_v7 = vmul.f32 %v1991_v9, %v712_v50 }
 0x1fc   :  { %834 = vrot.lane.b32.xlu0 %v793_v59, %s1653_s20  ;;  %1612 = vrcp.f32 %v1041_v42 }
 0x1fd   :  { %v2217_v55 = vpop.permute.xlu1 %453  ;;  %v2222_v58 = vpop.permute.xlu0 %417 }
 0x1ff   :  { %1004 = vrot.lane.b32.xlu1 %v2164_v29, %s1651_s18 }
 0x201   :  { %v2234_v59 = vpop.permute.xlu0 %449 }
 0x202   :  { %v2232_v56 = vpop.permute.xlu1 %661 }
 0x203   :  { %576 = vrot.lane.b32.xlu1 %v544_v20, %s1652_s19 }
 0x206   :  { %v2238_v1 = vpop.permute.xlu1 %693  ;;  %v2242_v27 = vpop.permute.xlu0 %657 }
 0x207   :  { %2957 = vst [vmem:[#allocation61_spill] sm:$0xff] %v2238_v1  ;;  %592 = vrot.lane.b32.xlu1 %v552_v16, %s1652_s19  ;;  %v1613_v42 = vpop.eup %1612 }
 0x20a   :  { %v2250_v20 = vpop.permute.xlu0 %689 }
 0x20b   :  { %v2248_v41 = vpop.permute.xlu1 %337  ;;  %2959 = vst [vmem:[#allocation63_spill] sm:$0xff] %v2250_v20  ;;  %816 = vrot.lane.b32.xlu1 %v784_v5, %s1653_s20 }
 0x20c   :  { %2958 = vst [vmem:[#allocation62_spill] sm:$0xff] %v2248_v41 }
 0x20e   :  { %v2256_v6 = vpop.permute.xlu0 %922 }
 0x20f   :  { %v2254_v44 = vpop.permute.xlu1 %369  ;;  %832 = vrot.lane.b32.xlu1 %v792_v7, %s1653_s20 }
 0x210   :  { %2960 = vst [vmem:[#allocation64_spill] sm:$0xff] %v2254_v44 }
 0x212   :  { %v2259_v16 = vpop.permute.xlu0 %938 }
 0x213   :  { %1095 = vperm.xlu1 %1610, %v1613_v42  }
 0x214   :  { %v2261_v11 = vpop.permute.xlu1 %497 }
 0x216   :  { %v2263_v61 = vpop.permute.xlu0 %349 }
 0x217   :  { %2961 = vst [vmem:[#allocation65_spill] sm:$0xff] %v2263_v61 }
 0x218   :  { %v2265_v41 = vpop.permute.xlu1 %529 }
 0x21a   :  { %v2267_v14 = vpop.permute.xlu0 %381 }
 0x21b   :  { %2962 = vst [vmem:[#allocation66_spill] sm:$0xff] %v2267_v14 }
 0x21d   :  { %v2269_v5 = vpop.permute.xlu1 %737 }
 0x21e   :  { %2963 = vst [vmem:[#allocation67_spill] sm:$0xff] %v2269_v5 }
 0x21f   :  { %v2271_v50 = vpop.permute.xlu0 %509 }
 0x221   :  { %v2273_v44 = vpop.permute.xlu1 %769 }
 0x222   :  { %2964 = vst [vmem:[#allocation68_spill] sm:$0xff] %v2273_v44 }
 0x223   :  { %v2275_v9 = vpop.permute.xlu0 %541 }
 0x224   :  { %2965 = vst [vmem:[#allocation69_spill] sm:$0xff] %v2275_v9 }
 0x225   :  { %v2277_v7 = vpop.permute.xlu1 %920 }
 0x228   :  { %v2281_v42 = vpop.permute.xlu0 %749 }
 0x229   :  { %v2279_v4 = vpop.permute.xlu1 %936  ;;  %2966 = vst [vmem:[#allocation70_spill] sm:$0xff] %v2281_v42 }
 0x22c   :  { %v2285_v61 = vpop.permute.xlu0 %781 }
 0x22d   :  { %v2283_v8 = vpop.permute.xlu1 %261  ;;  %2968 = vst [vmem:[#allocation72_spill] sm:$0xff] %v2285_v61 }
 0x22e   :  { %2967 = vst [vmem:[#allocation71_spill] sm:$0xff] %v2283_v8 }
 0x231   :  { %v2287_v60 = vpop.permute.xlu1 %301  ;;  %v2289_v14 = vpop.permute.xlu0 %256 }
 0x232   :  { %2969 = vst [vmem:[#allocation73_spill] sm:$0xff] %v2287_v60  ;;  %2970 = vst [vmem:[#allocation74_spill] sm:$0xff] %v2289_v14 }
 0x235   :  { %v2293_v57 = vpop.permute.xlu0 %296 }
 0x236   :  { %v2291_v23 = vpop.permute.xlu1 %429  ;;  %2971 = vst [vmem:[#allocation75_spill] sm:$0xff] %v2293_v57 }
 0x23a   :  { %v2295_v24 = vpop.permute.xlu1 %461  ;;  %v2297_v22 = vpop.permute.xlu0 %425 }
 0x23b   :  { %2972 = vst [vmem:[#allocation76_spill] sm:$0xff] %v2297_v22 }
 0x23e   :  { %v2301_v1 = vpop.permute.xlu0 %457 }
 0x23f   :  { %v2299_v10 = vpop.permute.xlu1 %669  ;;  %2974 = vst [vmem:[#allocation78_spill] sm:$0xff] %v2301_v1 }
 0x240   :  { %2973 = vst [vmem:[#allocation77_spill] sm:$0xff] %v2299_v10 }
 0x243   :  { %v2303_v21 = vpop.permute.xlu1 %701  ;;  %v2305_v8 = vpop.permute.xlu0 %665 }
 0x244   :  { %2975 = vst [vmem:[#allocation79_spill] sm:$0xff] %v2303_v21  ;;  %2976 = vst [vmem:[#allocation80_spill] sm:$0xff] %v2305_v8 }
 0x247   :  { %v2309_v60 = vpop.permute.xlu0 %697 }
 0x248   :  { %v2307_v61 = vpop.permute.xlu1 %345  ;;  %2978 = vst [vmem:[#allocation82_spill] sm:$0xff] %v2309_v60  ;;  %v969_v60 = vadd.f32 %v2025_v18, %v1843_v43  ;;  %v968_v43 = vadd.f32 %v2009_v13, %v1822_v39  ;;  %v475_v39 = vsub.f32 %v1758_v26, %v2055_v17 }
 0x249   :  { %2977 = vst [vmem:[#allocation81_spill] sm:$0xff] %v2307_v61 }
 0x24a   :  { %v555_v13 = vmul.f32 %v2066_v37, %v475_v39 }
 0x24b   :  { %v927_v29 = vpop.permute.xlu0 %926 }
 0x24c   :  { %v2313_v57 = vpop.permute.xlu1 %377  ;;  %v967_v61 = vadd.f32 %v927_v29, %v2103_v48 }
 0x24d   :  { %2979 = vst [vmem:[#allocation83_spill] sm:$0xff] %v2313_v57  ;;  %v960_v57 = vadd.f32 %v2003_v12, %v1813_v38 }
 0x24f   :  { %v2315_v42 = vpop.permute.xlu0 %942 }
 0x251   :  { %v2317_v22 = vpop.permute.xlu1 %505 }
 0x252   :  { %2980 = vst [vmem:[#allocation84_spill] sm:$0xff] %v2317_v22 }
 0x253   :  { %v983_v44 = vpop.permute.xlu0 %982 }
 0x255   :  { %v2319_v1 = vpop.permute.xlu1 %537 }
 0x256   :  { %2981 = vst [vmem:[#allocation85_spill] sm:$0xff] %v2319_v1  ;;  %v1024_v1 = vadd.f32 %v2015_v15, %v960_v57 }
 0x257   :  { %v2321_v21 = vpop.permute.xlu0 %986 }
 0x25a   :  { %v2323_v8 = vpop.permute.xlu1 %745 }
 0x25b   :  { %2982 = vst [vmem:[#allocation86_spill] sm:$0xff] %v2323_v8  ;;  %v991_v10 = vpop.permute.xlu0 %990  ;;  %v1040_v8 = vadd.f32 1e-06, %v1024_v1 }
 0x25c   :  { %v2326_v9 = vadd.f32 %v991_v10, %v967_v61 }
 0x25e   :  { %v2328_v14 = vpop.permute.xlu1 %777 }
 0x25f   :  { %v995_v45 = vpop.permute.xlu0 %994 }
 0x260   :  { %v1033_v22 = vadd.f32 %v995_v45, %v969_v60 }
 0x262   :  { %v925_v20 = vpop.permute.xlu1 %924  ;;  %v1049_v5 = vadd.f32 1e-06, %v1033_v22  ;;  %v963_v22 = vadd.f32 %v2120_v40, %v1886_v46 }
 0x263   :  { %v966_v10 = vadd.f32 %v925_v20, %v2151_v34  ;;  %v999_v1 = vpop.permute.xlu0 %998  ;;  %v971_v20 = vadd.f32 %v2127_v51, %v1894_v47  ;;  %v715_v47 = vsub.f32 %v1758_v26, %v2068_v0  ;;  %v962_v51 = vadd.f32 %v2157_v31, %v1916_v52 }
 0x264   :  { %1614 = vrcp.f32 %v1049_v5  ;;  %v1027_v15 = vadd.f32 %v983_v44, %v963_v22  ;;  %v970_v0 = vadd.f32 %v2170_v63, %v1924_v53  ;;  %v2988_v53 = vld [vmem:[#allocation9_spill] sm:$0xff] }
 0x265   :  { %1616 = vrcp.f32 %v1040_v8  ;;  %v467_v8 = vsub.f32 %v1756_v25, %v2047_v32  ;;  %v1035_v46 = vadd.f32 %v999_v1, %v971_v20  ;;  %v707_v32 = vsub.f32 %v1756_v25, %v2061_v35 }
 0x266   :  { %v2335_v29 = vpop.permute.xlu1 %940  ;;  %v1043_v40 = vadd.f32 1e-06, %v1027_v15  ;;  %v466_v35 = vsub.f32 %v1762_v28, %v2097_v36  ;;  %v469_v63 = vsub.f32 %v2988_v53, %v2209_v54  ;;  %v2993_v54 = vld [vmem:[#allocation10_spill] sm:$0xff] }
 0x267   :  { %v547_v34 = vmul.f32 %v2059_v2, %v467_v8  ;;  %v1051_v44 = vadd.f32 1e-06, %v1035_v46  ;;  %v787_v5 = vmul.f32 %v2073_v3, %v707_v32  ;;  %v1003_v20 = vpop.permute.xlu0 %1002 }
 0x26a   :  { %v2337_v48 = vpop.permute.xlu1 %984 }
 0x26e   :  { %v989_v61 = vpop.permute.xlu1 %988  ;;  %v1615_v38 = vpop.eup %1614 }
 0x26f   :  { %v2340_v12 = vadd.f32 %v989_v61, %v966_v10  ;;  %1135 = vperm.xlu0 %1611, %v1615_v38   ;;  %v1617_v57 = vpop.eup %1616  ;;  %v795_v10 = vmul.f32 %v2080_v62, %v715_v47  ;;  %v1026_v61 = vadd.f32 %v2176_v19, %v962_v51  ;;  %v546_v38 = vmul.f32 %v2110_v49, %v466_v35  ;;  %v2986_v19 = vld [vmem:[#allocation47_spill] sm:$0xff]  ;;  %v2994_v35 = vld [vmem:[#allocation52_spill] sm:$0xff] }
 0x271   :  { %v1042_v22 = vadd.f32 1e-06, %v1026_v61 }
 0x272   :  { %v993_v45 = vpop.permute.xlu1 %992 }
 0x273   :  { %v1032_v60 = vadd.f32 %v993_v45, %v968_v43  ;;  %1090 = vperm.xlu0 %1611, %v1617_v57   ;;  %v2983_v45 = vld [vmem:[#allocation44_spill] sm:$0xff] }
 0x274   :  { %v2984_v57 = vld [vmem:[#allocation8_spill] sm:$0xff] }
 0x275   :  { %v1048_v18 = vadd.f32 1e-06, %v1032_v60  ;;  %v474_v31 = vsub.f32 %v2984_v57, %v2983_v45  ;;  %v2985_v60 = vld [vmem:[#allocation30_spill] sm:$0xff] }
 0x276   :  { %v997_v43 = vpop.permute.xlu1 %996  ;;  %v965_v36 = vadd.f32 %v2256_v6, %v2985_v60  ;;  %v2997_v60 = vld [vmem:[#allocation11_spill] sm:$0xff] }
 0x277   :  { %1618 = vrcp.f32 %v1048_v18  ;;  %582 = vrot.lane.b32.xlu0 %v547_v34, %s1652_s19  ;;  %v1034_v8 = vadd.f32 %v997_v43, %v970_v0  ;;  %v554_v15 = vmul.f32 %v2986_v19, %v474_v31  ;;  %v2987_v34 = vld [vmem:[#allocation48_spill] sm:$0xff]  ;;  %v709_v0 = vsub.f32 %v2988_v53, %v2232_v56 }
 0x278   :  { %1620 = vrcp.f32 %v1043_v40  ;;  %v1029_v18 = vadd.f32 %v2321_v21, %v965_v36  ;;  %v706_v1 = vsub.f32 %v1762_v28, %v2987_v34  ;;  %v2989_v40 = vld [vmem:[#allocation33_spill] sm:$0xff]  ;;  %v468_v36 = vsub.f32 %v2997_v60, %v2222_v58 }
 0x279   :  { %1622 = vrcp.f32 %v1051_v44  ;;  %v973_v6 = vadd.f32 %v2259_v16, %v2989_v40  ;;  %v1050_v46 = vadd.f32 1e-06, %v1034_v8  ;;  %v972_v34 = vadd.f32 %v2279_v4, %v2043_v33  ;;  %v3000_v40 = vld [vmem:[#allocation46_spill] sm:$0xff] }
 0x27a   :  { %1624 = vrcp.f32 %v1042_v22  ;;  %v1045_v44 = vadd.f32 1e-06, %v1029_v18  ;;  %v1001_v18 = vpop.permute.xlu1 %1000  ;;  %v1047_v33 = vadd.f32 1e-06, %v2326_v9 }
 0x27b   :  { %598 = vrot.lane.b32.xlu0 %v555_v13, %s1652_s19  ;;  %v2990_v13 = vld [vmem:[#allocation50_spill] sm:$0xff]  ;;  %v1037_v21 = vadd.f32 %v1003_v20, %v973_v6  ;;  %1626 = vrcp.f32 %v1050_v46  ;;  %v2999_v20 = vld [vmem:[#allocation13_spill] sm:$0xff]  ;;  %v1036_v46 = vadd.f32 %v1001_v18, %v972_v34  ;;  %v3009_v34 = vld [vmem:[#allocation76_spill] sm:$0xff] }
 0x27c   :  { %v786_v32 = vmul.f32 %v2990_v13, %v706_v1  ;;  %1628 = vrcp.f32 %v1045_v44  ;;  %v2998_v1 = vld [vmem:[#allocation12_spill] sm:$0xff]  ;;  %v3001_v44 = vld [vmem:[#allocation14_spill] sm:$0xff] }
 0x27d   :  { %v1053_v16 = vadd.f32 1e-06, %v1037_v21  ;;  %v479_v21 = vsub.f32 %v3001_v44, %v2295_v24  ;;  %v3006_v24 = vld [vmem:[#allocation68_spill] sm:$0xff] }
 0x27f   :  { %822 = vrot.lane.b32.xlu0 %v787_v5, %s1653_s20  ;;  %v2991_v5 = vld [vmem:[#allocation45_spill] sm:$0xff]  ;;  %1630 = vrcp.f32 %v1053_v16 }
 0x280   :  { %v714_v47 = vsub.f32 %v2984_v57, %v2991_v5  ;;  %v3002_v5 = vld [vmem:[#allocation67_spill] sm:$0xff] }
 0x281   :  { %v1619_v17 = vpop.eup %1618 }
 0x282   :  { %1130 = vperm.xlu1 %1610, %v1619_v17   ;;  %v1621_v52 = vpop.eup %1620  ;;  %v2992_v17 = vld [vmem:[#allocation53_spill] sm:$0xff]  ;;  %v794_v61 = vmul.f32 %v2994_v35, %v714_v47 }
 0x283   :  { %838 = vrot.lane.b32.xlu0 %v795_v10, %s1653_s20  ;;  %v1623_v39 = vpop.eup %1622  ;;  %v549_v51 = vmul.f32 %v2992_v17, %v469_v63  ;;  %v477_v10 = vsub.f32 %v2993_v54, %v2217_v55  ;;  %v789_v55 = vmul.f32 %v2178_v30, %v709_v0  ;;  %v476_v63 = vsub.f32 %v2998_v1, %v2234_v59 }
 0x284   :  { %v1625_v45 = vpop.eup %1624  ;;  %v708_v59 = vsub.f32 %v2997_v60, %v2242_v27  ;;  %v3004_v27 = vld [vmem:[#allocation69_spill] sm:$0xff] }
 0x285   :  { %v1627_v31 = vpop.eup %1626  ;;  %v559_v16 = vmul.f32 %v3004_v27, %v479_v21 }
 0x286   :  { %580 = vrot.lane.b32.xlu1 %v546_v38, %s1652_s19  ;;  %v2995_v38 = vld [vmem:[#allocation55_spill] sm:$0xff]  ;;  %v1629_v56 = vpop.eup %1628  ;;  %v788_v47 = vmul.f32 %v3002_v5, %v708_v59  ;;  %v3014_v59 = vld [vmem:[#allocation82_spill] sm:$0xff] }
 0x287   :  { %1105 = vperm.xlu0 %1611, %v1621_v52   ;;  %v557_v43 = vmul.f32 %v2995_v38, %v477_v10  ;;  %v2996_v52 = vld [vmem:[#allocation37_spill] sm:$0xff]  ;;  %v3003_v10 = vld [vmem:[#allocation63_spill] sm:$0xff] }
 0x288   :  { %v964_v22 = vadd.f32 %v2277_v7, %v2996_v52  ;;  %v471_v7 = vsub.f32 %v2999_v20, %v2291_v23 }
 0x289   :  { %v1631_v58 = vpop.eup %1630 }
 0x28a   :  { %596 = vrot.lane.b32.xlu1 %v554_v15, %s1652_s19  ;;  %v1028_v8 = vadd.f32 %v2337_v48, %v964_v22  ;;  %v548_v15 = vmul.f32 %v2261_v11, %v468_v36  ;;  %v975_v48 = vadd.f32 %v2315_v42, %v3000_v40  ;;  %v551_v23 = vmul.f32 %v2271_v50, %v471_v7 }
 0x28b   :  { %1145 = vperm.xlu0 %1611, %v1623_v39   ;;  %v1007_v39 = vpop.permute.xlu0 %1006  ;;  %v1052_v42 = vadd.f32 1e-06, %v1036_v46 }
 0x28c   :  { %v1044_v6 = vadd.f32 1e-06, %v1028_v8  ;;  %v1039_v4 = vadd.f32 %v1007_v39, %v975_v48  ;;  %v3011_v48 = vld [vmem:[#allocation84_spill] sm:$0xff] }
 0x28e   :  { %820 = vrot.lane.b32.xlu1 %v786_v32, %s1653_s20  ;;  %v556_v32 = vmul.f32 %v2265_v41, %v476_v63  ;;  %1632 = vrcp.f32 %v1044_v6  ;;  %v1055_v9 = vadd.f32 1e-06, %v1039_v4  ;;  %v3010_v63 = vld [vmem:[#allocation15_spill] sm:$0xff] }
 0x28f   :  { %586 = vrot.lane.b32.xlu0 %v549_v51, %s1652_s19  ;;  %v1005_v51 = vpop.permute.xlu1 %1004  ;;  %1634 = vrcp.f32 %v1047_v33  ;;  %v470_v7 = vsub.f32 %v3010_v63, %v3009_v34  ;;  %v579_v46 = vpop.permute.xlu0 %578  ;;  %v3013_v33 = vld [vmem:[#allocation16_spill] sm:$0xff] }
 0x290   :  { %1636 = vrcp.f32 %v1052_v42 }
 0x291   :  { %1638 = vrcp.f32 %v1055_v9  ;;  %v550_v6 = vmul.f32 %v3011_v48, %v470_v7 }
 0x292   :  { %836 = vrot.lane.b32.xlu1 %v794_v61, %s1653_s20  ;;  %v716_v61 = vsub.f32 %v2998_v1, %v3003_v10 }
 0x293   :  { %602 = vrot.lane.b32.xlu0 %v557_v43, %s1652_s19  ;;  %v3005_v43 = vld [vmem:[#allocation77_spill] sm:$0xff]  ;;  %v2436_v52 = vpop.permute.xlu1 %576  ;;  %v595_v10 = vpop.permute.xlu0 %594 }
 0x294   :  { %v711_v0 = vsub.f32 %v2999_v20, %v3005_v43 }
 0x296   :  { %1100 = vperm.xlu1 %1610, %v1625_v45   ;;  %v796_v45 = vmul.f32 %v3006_v24, %v716_v61  ;;  %v3018_v61 = vld [vmem:[#allocation86_spill] sm:$0xff] }
 0x297   :  { %826 = vrot.lane.b32.xlu0 %v789_v55, %s1653_s20  ;;  %v3007_v55 = vld [vmem:[#allocation70_spill] sm:$0xff] }
 0x298   :  { %v1633_v22 = vpop.eup %1632 }
 0x299   :  { %v1635_v36 = vpop.eup %1634 }
 0x29a   :  { %1140 = vperm.xlu1 %1610, %v1627_v31   ;;  %v791_v31 = vmul.f32 %v3007_v55, %v711_v0  ;;  %v1637_v8 = vpop.eup %1636  ;;  %v3019_v0 = vld [vmem:[#allocation18_spill] sm:$0xff] }
 0x29b   :  { %1115 = vperm.xlu0 %1611, %v1629_v56   ;;  %v2440_v56 = vpop.permute.xlu1 %592  ;;  %v1639_v39 = vpop.eup %1638 }
 0x29e   :  { %584 = vrot.lane.b32.xlu1 %v548_v15, %s1652_s19  ;;  %v3008_v15 = vld [vmem:[#allocation54_spill] sm:$0xff] }
 0x29f   :  { %1155 = vperm.xlu0 %1611, %v1631_v58   ;;  %v974_v18 = vadd.f32 %v2335_v29, %v3008_v15  ;;  %v1046_v58 = vadd.f32 1e-06, %v2340_v12  ;;  %v817_v21 = vpop.permute.xlu1 %816 }
 0x2a1   :  { %v1038_v40 = vadd.f32 %v1005_v51, %v974_v18  ;;  %1640 = vrcp.f32 %v1046_v58  ;;  %v3017_v51 = vld [vmem:[#allocation80_spill] sm:$0xff] }
 0x2a2   :  { %600 = vrot.lane.b32.xlu1 %v556_v32, %s1652_s19  ;;  %v3012_v32 = vld [vmem:[#allocation78_spill] sm:$0xff]  ;;  %v710_v9 = vsub.f32 %v3010_v63, %v3017_v51  ;;  %v3026_v51 = vld [vmem:[#allocation21_spill] sm:$0xff] }
 0x2a3   :  { %590 = vrot.lane.b32.xlu0 %v551_v23, %s1652_s19  ;;  %v478_v4 = vsub.f32 %v3013_v33, %v3012_v32  ;;  %v3015_v23 = vsub.f32 %v3013_v33, %v3014_v59  ;;  %v1054_v42 = vadd.f32 1e-06, %v1038_v40  ;;  %v833_v43 = vpop.permute.xlu1 %832  ;;  %v3023_v32 = vld [vmem:[#allocation57_spill] sm:$0xff]  ;;  %v3024_v59 = vld [vmem:[#allocation79_spill] sm:$0xff] }
 0x2a5   :  { %v798_v29 = vmul.f32 %v2328_v14, %v3015_v23  ;;  %1642 = vrcp.f32 %v1054_v42  ;;  %v719_v23 = vsub.f32 %v3001_v44, %v3024_v59  ;;  %v3025_v42 = vld [vmem:[#allocation72_spill] sm:$0xff] }
 0x2a6   :  { %824 = vrot.lane.b32.xlu1 %v788_v47, %s1653_s20  ;;  %v3016_v47 = vld [vmem:[#allocation85_spill] sm:$0xff] }
 0x2a7   :  { %606 = vrot.lane.b32.xlu0 %v559_v16, %s1652_s19  ;;  %v558_v12 = vmul.f32 %v3016_v47, %v478_v4  ;;  %v790_v16 = vmul.f32 %v3018_v61, %v710_v9  ;;  %v1096_v34 = vpop.permute.xlu1 %1095 }
 0x2aa   :  { %840 = vrot.lane.b32.xlu1 %v796_v45, %s1653_s20  ;;  %v3020_v45 = vld [vmem:[#allocation2_spill] sm:$0xff] }
 0x2ab   :  { %830 = vrot.lane.b32.xlu0 %v791_v31, %s1653_s20  ;;  %v305_v31 = vsub.f32 %v3020_v45, %v3019_v0  ;;  %v1641_v15 = vpop.eup %1640  ;;  %v3028_v0 = vld [vmem:[#allocation3_spill] sm:$0xff] }
 0x2ae   :  { %1110 = vperm.xlu1 %1610, %v1633_v22   ;;  %v3021_v22 = vld [vmem:[#allocation19_spill] sm:$0xff] }
 0x2af   :  { %1125 = vperm.xlu0 %1611, %v1635_v36   ;;  %v385_v36 = vmul.f32 %v3021_v22, %v305_v31  ;;  %v1643_v40 = vpop.eup %1642 }
 0x2b1   :  { %v625_v18 = vadd.f32 %v579_v46, %v385_v36  ;;  %v3029_v36 = vld [vmem:[#allocation20_spill] sm:$0xff] }
 0x2b2   :  { %1150 = vperm.xlu1 %1610, %v1637_v8   ;;  %v819_v8 = vpop.permute.xlu0 %818 }
 0x2b3   :  { %1165 = vperm.xlu0 %1611, %v1639_v39   ;;  %v865_v7 = vadd.f32 %v819_v8, %v625_v18  ;;  %v3022_v39 = vld [vmem:[#allocation61_spill] sm:$0xff]  ;;  %v3030_v18 = vld [vmem:[#allocation26_spill] sm:$0xff] }
 0x2b4   :  { %v717_v58 = vsub.f32 %v2993_v54, %v3022_v39 }
 0x2b5   :  { %vm1073_vm1 = vcmp.ge.f32.partialorder %v865_v7, 0.0 }
 0x2b6   :  { %588 = vrot.lane.b32.xlu1 %v550_v6, %s1652_s19  ;;  %v1169_v6 = vmul.f32 %v1096_v34, %v865_v7  ;;  %v797_v4 = vmul.f32 %v3023_v32, %v717_v58  ;;  %v3031_v34 = vld [vmem:[#allocation5_spill] sm:$0xff] }
 0x2b7   :  { %844 = vrot.lane.b32.xlu0 %v798_v29, %s1653_s20  ;;  %v304_v39 = vsub.f32 %v3031_v34, %v3030_v18 }
 0x2b8   :  { %v1185_v29 = vmul.f32 0.8, %v1169_v6 }
 0x2ba   :  { %604 = vrot.lane.b32.xlu1 %v558_v12, %s1652_s19  ;;  %v799_v12 = vmul.f32 %v3025_v42, %v719_v23  ;;  %v2472_v46 = vsel %vm1073_vm1, 0.0, %v1185_v29  ;;  %vm1392_vm1 = vcmask 130048  }
 0x2bb   :  { %v1233_v9 = vmul.f32 %v2472_v46, %v3026_v51 }
 0x2be   :  { %828 = vrot.lane.b32.xlu1 %v790_v16, %s1653_s20  ;;  %v3027_v16 = vld [vmem:[#allocation17_spill] sm:$0xff] }
 0x2bf   :  { %v313_v31 = vsub.f32 %v3028_v0, %v3027_v16 }
 0x2c1   :  { %v393_v8 = vmul.f32 %v3029_v36, %v313_v31  ;;  %v3033_v31 = vld [vmem:[#allocation22_spill] sm:$0xff] }
 0x2c2   :  { %1120 = vperm.xlu1 %1610, %v1641_v15   ;;  %v835_v15 = vpop.permute.xlu0 %834 }
 0x2c3   :  { %v633_v7 = vadd.f32 %v595_v10, %v393_v8  ;;  %v3034_v8 = vld [vmem:[#allocation27_spill] sm:$0xff] }
 0x2c5   :  { %v873_v58 = vadd.f32 %v835_v15, %v633_v7  ;;  %v3035_v15 = vld [vmem:[#allocation4_spill] sm:$0xff]  ;;  %v3037_v7 = vld [vmem:[#allocation31_spill] sm:$0xff] }
 0x2c6   :  { %1160 = vperm.xlu1 %1610, %v1643_v40   ;;  %v3032_v40 = vld [vmem:[#allocation28_spill] sm:$0xff]  ;;  %v312_v18 = vsub.f32 %v3035_v15, %v3034_v8  ;;  %v3041_v8 = vld [vmem:[#allocation38_spill] sm:$0xff] }
 0x2c7   :  { %v384_v6 = vmul.f32 %v3032_v40, %v304_v39  ;;  %vm1081_vm2 = vcmp.ge.f32.partialorder %v873_v58, 0.0  ;;  %v3044_v40 = vld [vmem:[#allocation29_spill] sm:$0xff] }
 0x2c9   :  { %v624_v59 = vadd.f32 %v2436_v52, %v384_v6 }
 0x2ca   :  { %842 = vrot.lane.b32.xlu1 %v797_v4, %s1653_s20 }
 0x2cb   :  { %v864_v29 = vadd.f32 %v817_v21, %v624_v59  ;;  %v3036_v21 = vld [vmem:[#allocation23_spill] sm:$0xff] }
 0x2cc   :  { %v1249_v39 = vmul.f32 %v2472_v46, %v3036_v21 }
 0x2cd   :  { %vm1072_vm3 = vcmp.ge.f32.partialorder %v864_v29, 0.0 }
 0x2ce   :  { %846 = vrot.lane.b32.xlu1 %v799_v12, %s1653_s20 }
 0x2d2   :  { %1282 = vrot.lane.b32.xlu1 %v1233_v9, %s1654_s21 }
 0x2ee   :  { %v1136_v4 = vpop.permute.xlu0 %1135 }
 0x2ef   :  { %v1177_v23 = vmul.f32 %v1136_v4, %v873_v58  ;;  %v3038_v4 = vld [vmem:[#allocation25_spill] sm:$0xff] }
 0x2f0   :  { %v392_v59 = vmul.f32 %v3038_v4, %v312_v18 }
 0x2f1   :  { %v1193_v12 = vmul.f32 0.8, %v1177_v23 }
 0x2f2   :  { %v1091_v51 = vpop.permute.xlu0 %1090 }
 0x2f3   :  { %v2485_v9 = vsel %vm1081_vm2, 0.0, %v1193_v12  ;;  %v1168_v16 = vmul.f32 %v1091_v51, %v864_v29  ;;  %v3040_v12 = vld [vmem:[#allocation35_spill] sm:$0xff]  ;;  %vm1409_vm2 = vcmask 261120  }
 0x2f4   :  { %v1241_v0 = vmul.f32 %v2485_v9, %v3033_v31  ;;  %v307_v51 = vsub.f32 %v1756_v25, %v3040_v12 }
 0x2f5   :  { %v1184_v45 = vmul.f32 0.8, %v1168_v16 }
 0x2f6   :  { %v583_v10 = vpop.permute.xlu0 %582  ;;  %1298 = vrot.lane.b32.xlu1 %v1241_v0, %s1654_s21  ;;  %v3039_v0 = vld [vmem:[#allocation24_spill] sm:$0xff]  ;;  %v387_v21 = vmul.f32 %v3041_v8, %v307_v51 }
 0x2f7   :  { %v2492_v52 = vsel %vm1072_vm3, 0.0, %v1184_v45  ;;  %v1257_v23 = vmul.f32 %v2485_v9, %v3039_v0  ;;  %v632_v45 = vadd.f32 %v2440_v56, %v392_v59  ;;  %v3043_v56 = vld [vmem:[#allocation39_spill] sm:$0xff]  ;;  %vm1442_vm3 = vcmask 392192  }
 0x2f8   :  { %v1232_v58 = vmul.f32 %v2492_v52, %v3037_v7  ;;  %v627_v15 = vadd.f32 %v583_v10, %v387_v21  ;;  %v3045_v10 = vld [vmem:[#allocation34_spill] sm:$0xff] }
 0x2f9   :  { %v872_v16 = vadd.f32 %v833_v43, %v632_v45 }
 0x2fa   :  { %v599_v6 = vpop.permute.xlu0 %598  ;;  %1280 = vrot.lane.b32.xlu0 %v1232_v58, %s1654_s21  ;;  %1346 = vrot.lane.b32.xlu1 %v1249_v39, %s1655_s22  ;;  %v3042_v39 = vld [vmem:[#allocation36_spill] sm:$0xff] }
 0x2fb   :  { %v315_v18 = vsub.f32 %v1758_v26, %v3042_v39  ;;  %vm1080_vm4 = vcmp.ge.f32.partialorder %v872_v16, 0.0 }
 0x2fd   :  { %v395_v59 = vmul.f32 %v3043_v56, %v315_v18 }
 0x2fe   :  { %v823_v29 = vpop.permute.xlu0 %822  ;;  %1362 = vrot.lane.b32.xlu1 %v1257_v23, %s1655_s22 }
 0x2ff   :  { %v867_v4 = vadd.f32 %v823_v29, %v627_v15  ;;  %v635_v12 = vadd.f32 %v599_v6, %v395_v59  ;;  %v3046_v6 = vld [vmem:[#allocation40_spill] sm:$0xff] }
 0x300   :  { %v306_v29 = vsub.f32 %v1762_v28, %v3046_v6 }
 0x301   :  { %v1131_v31 = vpop.permute.xlu1 %1130  ;;  %vm1075_vm5 = vcmp.ge.f32.partialorder %v867_v4, 0.0 }
 0x302   :  { %v1176_v7 = vmul.f32 %v1131_v31, %v872_v16  ;;  %v839_v58 = vpop.permute.xlu0 %838  ;;  %v1248_v16 = vmul.f32 %v2492_v52, %v3045_v10 }
 0x303   :  { %v875_v25 = vadd.f32 %v839_v58, %v635_v12  ;;  %v3047_v58 = vld [vmem:[#allocation32_spill] sm:$0xff]  ;;  %v3049_v12 = vld [vmem:[#allocation41_spill] sm:$0xff] }
 0x304   :  { %v1192_v34 = vmul.f32 0.8, %v1176_v7 }
 0x305   :  { %v581_v0 = vpop.permute.xlu1 %580  ;;  %vm1083_vm6 = vcmp.ge.f32.partialorder %v875_v25, 0.0 }
 0x306   :  { %v2511_v23 = vsel %vm1080_vm4, 0.0, %v1192_v34  ;;  %v1106_v45 = vpop.permute.xlu0 %1105 }
 0x307   :  { %v1240_v43 = vmul.f32 %v2511_v23, %v3044_v40  ;;  %v1171_v51 = vmul.f32 %v1106_v45, %v867_v4  ;;  %v1256_v59 = vmul.f32 %v2511_v23, %v3047_v58  ;;  %v3048_v4 = vld [vmem:[#allocation42_spill] sm:$0xff] }
 0x308   :  { %v314_v45 = vsub.f32 %v2984_v57, %v3048_v4 }
 0x309   :  { %1296 = vrot.lane.b32.xlu0 %v1240_v43, %s1654_s21  ;;  %v597_v31 = vpop.permute.xlu1 %596  ;;  %v1187_v39 = vmul.f32 0.8, %v1171_v51  ;;  %v386_v51 = vmul.f32 %v3049_v12, %v306_v29 }
 0x30a   :  { %v1146_v21 = vpop.permute.xlu0 %1145 }
 0x30b   :  { %v2518_v7 = vsel %vm1075_vm5, 0.0, %v1187_v39  ;;  %v1179_v34 = vmul.f32 %v1146_v21, %v875_v25  ;;  %v626_v25 = vadd.f32 %v581_v0, %v386_v51 }
 0x30c   :  { %v1235_v15 = vmul.f32 %v2518_v7, %v2059_v2  ;;  %v1251_v29 = vmul.f32 %v2518_v7, %v2073_v3 }
 0x30d   :  { %1344 = vrot.lane.b32.xlu0 %v1248_v16, %s1655_s22  ;;  %v821_v40 = vpop.permute.xlu1 %820  ;;  %v1195_v18 = vmul.f32 0.8, %v1179_v34  ;;  %v3050_v16 = vld [vmem:[#allocation56_spill] sm:$0xff] }
 0x30e   :  { %v587_v43 = vpop.permute.xlu0 %586  ;;  %1286 = vrot.lane.b32.xlu1 %v1235_v15, %s1654_s21  ;;  %v309_v21 = vsub.f32 %v2988_v53, %v3050_v16  ;;  %v3051_v15 = vld [vmem:[#allocation43_spill] sm:$0xff]  ;;  %v866_v58 = vadd.f32 %v821_v40, %v626_v25 }
 0x30f   :  { %v2531_v2 = vsel %vm1083_vm6, 0.0, %v1195_v18  ;;  %v394_v6 = vmul.f32 %v3051_v15, %v314_v45 }
 0x310   :  { %v1243_v39 = vmul.f32 %v2531_v2, %v2066_v37  ;;  %v3052_v37 = vld [vmem:[#allocation49_spill] sm:$0xff]  ;;  %vm1074_vm7 = vcmp.ge.f32.partialorder %v866_v58, 0.0 }
 0x311   :  { %1360 = vrot.lane.b32.xlu0 %v1256_v59, %s1655_s22  ;;  %v837_v10 = vpop.permute.xlu1 %836  ;;  %v634_v4 = vadd.f32 %v597_v31, %v394_v6  ;;  %v389_v57 = vmul.f32 %v3052_v37, %v309_v21 }
 0x312   :  { %v2538_v34 = vpop.permute.xlu0 %602  ;;  %1302 = vrot.lane.b32.xlu1 %v1243_v39, %s1654_s21  ;;  %v1259_v39 = vmul.f32 %v2531_v2, %v2080_v62 }
 0x313   :  { %v629_v16 = vadd.f32 %v587_v43, %v389_v57  ;;  %v874_v0 = vadd.f32 %v837_v10, %v634_v4 }
 0x315   :  { %v1101_v18 = vpop.permute.xlu1 %1100  ;;  %vm1082_vm8 = vcmp.ge.f32.partialorder %v874_v0, 0.0 }
 0x316   :  { %v1170_v59 = vmul.f32 %v1101_v18, %v866_v58  ;;  %v827_v28 = vpop.permute.xlu0 %826  ;;  %1350 = vrot.lane.b32.xlu1 %v1251_v29, %s1655_s22 }
 0x317   :  { %v869_v25 = vadd.f32 %v827_v28, %v629_v16  ;;  %v3053_v16 = vld [vmem:[#allocation59_spill] sm:$0xff] }
 0x318   :  { %v1186_v51 = vmul.f32 0.8, %v1170_v59 }
 0x319   :  { %v1141_v45 = vpop.permute.xlu1 %1140  ;;  %vm1077_vm9 = vcmp.ge.f32.partialorder %v869_v25, 0.0 }
 0x31a   :  { %v2548_v40 = vsel %vm1074_vm7, 0.0, %v1186_v51  ;;  %v1178_v3 = vmul.f32 %v1141_v45, %v874_v0  ;;  %v1116_v21 = vpop.permute.xlu0 %1115  ;;  %1366 = vrot.lane.b32.xlu1 %v1259_v39, %s1655_s22  ;;  %v308_v0 = vsub.f32 %v2997_v60, %v3053_v16 }
 0x31b   :  { %v1234_v31 = vmul.f32 %v2548_v40, %v2110_v49  ;;  %v1173_v29 = vmul.f32 %v1116_v21, %v869_v25  ;;  %v1250_v4 = vmul.f32 %v2548_v40, %v2990_v13  ;;  %v3055_v25 = vld [vmem:[#allocation60_spill] sm:$0xff] }
 0x31c   :  { %v1194_v6 = vmul.f32 0.8, %v1178_v3  ;;  %v316_v13 = vsub.f32 %v2998_v1, %v3055_v25  ;;  %v3056_v21 = vld [vmem:[#allocation64_spill] sm:$0xff] }
 0x31d   :  { %1284 = vrot.lane.b32.xlu0 %v1234_v31, %s1654_s21  ;;  %v585_v57 = vpop.permute.xlu1 %584  ;;  %v1189_v62 = vmul.f32 0.8, %v1173_v29 }
 0x31e   :  { %v2554_v43 = vsel %vm1082_vm8, 0.0, %v1194_v6  ;;  %v2558_v10 = vpop.permute.xlu0 %1155  ;;  %v396_v6 = vmul.f32 %v3056_v21, %v316_v13 }
 0x31f   :  { %v1242_v28 = vmul.f32 %v2554_v43, %v2986_v19  ;;  %v2560_v58 = vsel %vm1077_vm9, 0.0, %v1189_v62  ;;  %v1258_v51 = vmul.f32 %v2554_v43, %v2994_v35 }
 0x320   :  { %v1237_v49 = vmul.f32 %v2560_v58, %v2992_v17  ;;  %v3054_v17 = vld [vmem:[#allocation62_spill] sm:$0xff] }
 0x321   :  { %1300 = vrot.lane.b32.xlu0 %v1242_v28, %s1654_s21  ;;  %v601_v18 = vpop.permute.xlu1 %600  ;;  %v388_v39 = vmul.f32 %v3054_v17, %v308_v0 }
 0x322   :  { %1290 = vrot.lane.b32.xlu1 %v1237_v49, %s1654_s21  ;;  %v2568_v59 = vpop.permute.xlu0 %590  ;;  %v636_v28 = vadd.f32 %v601_v18, %v396_v6 }
 0x323   :  { %v628_v3 = vadd.f32 %v585_v57, %v388_v39 }
 0x325   :  { %1348 = vrot.lane.b32.xlu0 %v1250_v4, %s1655_s22  ;;  %v825_v19 = vpop.permute.xlu1 %824 }
 0x326   :  { %v2579_v31 = vpop.permute.xlu0 %606  ;;  %v868_v29 = vadd.f32 %v825_v19, %v628_v3  ;;  %v3057_v3 = vld [vmem:[#allocation74_spill] sm:$0xff] }
 0x327   :  { %v310_v6 = vsub.f32 %v3010_v63, %v3057_v3  ;;  %v3061_v3 = vld [vmem:[#allocation58_spill] sm:$0xff] }
 0x328   :  { %vm1076_vm10 = vcmp.ge.f32.partialorder %v868_v29, 0.0 }
 0x329   :  { %1364 = vrot.lane.b32.xlu0 %v1258_v51, %s1655_s22  ;;  %v841_v45 = vpop.permute.xlu1 %840 }
 0x32a   :  { %v876_v4 = vadd.f32 %v841_v45, %v636_v28  ;;  %v831_v35 = vpop.permute.xlu0 %830  ;;  %v3059_v28 = vld [vmem:[#allocation81_spill] sm:$0xff] }
 0x32c   :  { %vm1084_vm11 = vcmp.ge.f32.partialorder %v876_v4, 0.0 }
 0x32d   :  { %v1111_v62 = vpop.permute.xlu1 %1110 }
 0x32e   :  { %v1172_v49 = vmul.f32 %v1111_v62, %v868_v29  ;;  %v1126_v18 = vpop.permute.xlu0 %1125  ;;  %v3058_v29 = vld [vmem:[#allocation75_spill] sm:$0xff] }
 0x32f   :  { %v318_v62 = vsub.f32 %v3013_v33, %v3058_v29  ;;  %v317_v29 = vsub.f32 %v2993_v54, %v3061_v3 }
 0x330   :  { %v1188_v16 = vmul.f32 0.8, %v1172_v49  ;;  %v390_v49 = vmul.f32 %v3059_v28, %v310_v6 }
 0x331   :  { %v1151_v0 = vpop.permute.xlu1 %1150 }
 0x332   :  { %v2582_v53 = vsel %vm1076_vm10, 0.0, %v1188_v16  ;;  %v1180_v51 = vmul.f32 %v1151_v0, %v876_v4  ;;  %v1166_v4 = vpop.permute.xlu0 %1165 }
 0x333   :  { %v1236_v25 = vmul.f32 %v2582_v53, %v2261_v11  ;;  %v1252_v11 = vmul.f32 %v2582_v53, %v3002_v5 }
 0x334   :  { %v1196_v57 = vmul.f32 0.8, %v1180_v51 }
 0x335   :  { %1288 = vrot.lane.b32.xlu0 %v1236_v25, %s1654_s21  ;;  %v589_v39 = vpop.permute.xlu1 %588 }
 0x336   :  { %v2587_v19 = vsel %vm1084_vm11, 0.0, %v1196_v57  ;;  %v630_v0 = vadd.f32 %v589_v39, %v390_v49  ;;  %v845_v6 = vpop.permute.xlu0 %844  ;;  %v3062_v39 = vld [vmem:[#allocation51_spill] sm:$0xff] }
 0x337   :  { %v1244_v45 = vmul.f32 %v2587_v19, %v2265_v41  ;;  %v3060_v41 = vld [vmem:[#allocation83_spill] sm:$0xff]  ;;  %v1260_v25 = vmul.f32 %v2587_v19, %v3006_v24  ;;  %v397_v49 = vmul.f32 %v3062_v39, %v317_v29 }
 0x338   :  { %v398_v51 = vmul.f32 %v3060_v41, %v318_v62 }
 0x339   :  { %1304 = vrot.lane.b32.xlu0 %v1244_v45, %s1654_s21  ;;  %v605_v13 = vpop.permute.xlu1 %604 }
 0x33a   :  { %v638_v57 = vadd.f32 %v605_v13, %v398_v51  ;;  %v3063_v13 = vld [vmem:[#allocation71_spill] sm:$0xff] }
 0x33c   :  { %v878_v63 = vadd.f32 %v845_v6, %v638_v57 }
 0x33d   :  { %1352 = vrot.lane.b32.xlu0 %v1252_v11, %s1655_s22  ;;  %v829_v16 = vpop.permute.xlu1 %828 }
 0x33e   :  { %v870_v45 = vadd.f32 %v829_v16, %v630_v0  ;;  %v311_v16 = vsub.f32 %v2999_v20, %v3063_v13  ;;  %v637_v0 = vadd.f32 %v2538_v34, %v397_v49  ;;  %vm1086_vm13 = vcmp.ge.f32.partialorder %v878_v63, 0.0  ;;  %v3066_v34 = vld [vmem:[#allocation66_spill] sm:$0xff] }
 0x340   :  { %vm1078_vm12 = vcmp.ge.f32.partialorder %v870_v45, 0.0 }
 0x341   :  { %1368 = vrot.lane.b32.xlu0 %v1260_v25, %s1655_s22  ;;  %v1121_v5 = vpop.permute.xlu1 %1120  ;;  %v3064_v25 = vld [vmem:[#allocation73_spill] sm:$0xff] }
 0x342   :  { %v1174_v33 = vmul.f32 %v1121_v5, %v870_v45  ;;  %v319_v57 = vsub.f32 %v3001_v44, %v3064_v25 }
 0x344   :  { %v1190_v37 = vmul.f32 0.8, %v1174_v33 }
 0x345   :  { %v1161_v11 = vpop.permute.xlu1 %1160 }
 0x346   :  { %v2607_v62 = vsel %vm1078_vm12, 0.0, %v1190_v37  ;;  %v1182_v41 = vmul.f32 %v1161_v11, %v878_v63 }
 0x347   :  { %v1238_v24 = vmul.f32 %v2607_v62, %v3011_v48  ;;  %v3065_v48 = vld [vmem:[#allocation65_spill] sm:$0xff]  ;;  %v1254_v11 = vmul.f32 %v2607_v62, %v3018_v61  ;;  %v1253_v61 = vmul.f32 %v2560_v58, %v2178_v30 }
 0x348   :  { %v1198_v51 = vmul.f32 0.8, %v1182_v41  ;;  %v391_v3 = vmul.f32 %v3065_v48, %v311_v16  ;;  %v399_v41 = vmul.f32 %v3066_v34, %v319_v57  ;;  %v1217_v57 = vmul.f32 %v2472_v46, %v3021_v22 }
 0x349   :  { %1292 = vrot.lane.b32.xlu0 %v1238_v24, %s1654_s21  ;;  %v843_v33 = vpop.permute.xlu1 %842 }
 0x34a   :  { %v2617_v45 = vsel %vm1086_vm13, 0.0, %v1198_v51  ;;  %v877_v37 = vadd.f32 %v843_v33, %v637_v0  ;;  %v631_v63 = vadd.f32 %v2568_v59, %v391_v3  ;;  %v639_v24 = vadd.f32 %v2579_v31, %v399_v41  ;;  %v3067_v3 = vld [vmem:[#allocation2_spill] sm:$0xff] }
 0x34b   :  { %v1246_v5 = vmul.f32 %v2617_v45, %v3016_v47  ;;  %v1262_v0 = vmul.f32 %v2617_v45, %v2328_v14 }
 0x34c   :  { %v1181_v29 = vmul.f32 %v2558_v10, %v877_v37  ;;  %vm1085_vm14 = vcmp.ge.f32.partialorder %v877_v37, 0.0  ;;  %v871_v13 = vadd.f32 %v831_v35, %v631_v63  ;;  %v3068_v63 = vld [vmem:[#allocation3_spill] sm:$0xff] }
 0x34d   :  { %1308 = vrot.lane.b32.xlu0 %v1246_v5, %s1654_s21  ;;  %v847_v49 = vpop.permute.xlu1 %846  ;;  %v1225_v5 = vmul.f32 %v2485_v9, %v3029_v36 }
 0x34e   :  { %v1197_v6 = vmul.f32 0.8, %v1181_v29  ;;  %v1175_v16 = vmul.f32 %v1126_v18, %v871_v13  ;;  %v879_v59 = vadd.f32 %v847_v49, %v639_v24  ;;  %vm1079_vm15 = vcmp.ge.f32.partialorder %v871_v13, 0.0 }
 0x350   :  { %v2629_v47 = vsel %vm1085_vm14, 0.0, %v1197_v6  ;;  %v1191_v31 = vmul.f32 0.8, %v1175_v16  ;;  %v1183_v35 = vmul.f32 %v1166_v4, %v879_v59  ;;  %vm1087_vm0 = vcmp.ge.f32.partialorder %v879_v59, 0.0  ;;  %v3069_v6 = vld [vmem:[#allocation28_spill] sm:$0xff]  ;;  %v3071_v59 = vld [vmem:[#allocation5_spill] sm:$0xff] }
 0x351   :  { %v1245_v10 = vmul.f32 %v2629_v47, %v2995_v38  ;;  %1356 = vrot.lane.b32.xlu0 %v1254_v11, %s1655_s22  ;;  %v1261_v38 = vmul.f32 %v2629_v47, %v3023_v32  ;;  %v1283_v33 = vpop.permute.xlu1 %1282  ;;  %v1216_v11 = vmul.f32 %v2492_v52, %v3069_v6 }
 0x352   :  { %v2643_v18 = vsel %vm1079_vm15, 0.0, %v1191_v31  ;;  %v1199_v51 = vmul.f32 0.8, %v1183_v35 }
 0x353   :  { %1306 = vrot.lane.b32.xlu1 %v1245_v10, %s1654_s21  ;;  %v1239_v14 = vmul.f32 %v2643_v18, %v2271_v50  ;;  %v1255_v32 = vmul.f32 %v2643_v18, %v3007_v55  ;;  %v3070_v10 = vld [vmem:[#allocation25_spill] sm:$0xff] }
 0x354   :  { %v2648_v30 = vsel %vm1087_vm0, 0.0, %v1199_v51  ;;  %v1224_v16 = vmul.f32 %v2511_v23, %v3070_v10 }
 0x355   :  { %1372 = vrot.lane.b32.xlu0 %v1262_v0, %s1655_s22  ;;  %v1247_v4 = vmul.f32 %v2648_v30, %v3004_v27  ;;  %v1263_v25 = vmul.f32 %v2648_v30, %v3025_v42  ;;  %v1394_v27 = vsel %vm1392_vm1, %v1217_v57, %v1283_v33 }
 0x357   :  { %1354 = vrot.lane.b32.xlu1 %v1253_v61, %s1655_s22 }
 0x35b   :  { %1370 = vrot.lane.b32.xlu1 %v1261_v38, %s1655_s22  ;;  %v3072_v38 = vld [vmem:[#allocation4_spill] sm:$0xff] }
 0x35f   :  { %1294 = vrot.lane.b32.xlu1 %v1239_v14, %s1654_s21 }
 0x363   :  { %1310 = vrot.lane.b32.xlu1 %v1247_v4, %s1654_s21  ;;  %v1219_v4 = vmul.f32 %v2518_v7, %v3041_v8 }
 0x367   :  { %1358 = vrot.lane.b32.xlu1 %v1255_v32, %s1655_s22 }
 0x368   :  { %v1299_v50 = vpop.permute.xlu1 %1298 }
 0x369   :  { %v1402_v42 = vsel %vm1392_vm1, %v1225_v5, %v1299_v50  ;;  %v3073_v50 = vld [vmem:[#allocation6_spill] sm:$0xff] }
 0x36b   :  { %1374 = vrot.lane.b32.xlu1 %v1263_v25, %s1655_s22  ;;  %v1227_v25 = vmul.f32 %v2531_v2, %v3043_v56  ;;  %v1218_v2 = vmul.f32 %v2548_v40, %v3049_v12  ;;  %v3075_v40 = vld [vmem:[#allocation8_spill] sm:$0xff] }
 0x36c   :  { %v1347_v37 = vpop.permute.xlu1 %1346  ;;  %v1281_v36 = vpop.permute.xlu0 %1280 }
 0x36d   :  { %v1411_v55 = vsel %vm1409_vm2, %v1394_v27, %v1347_v37  ;;  %v1393_v49 = vsel %vm1392_vm1, %v1216_v11, %v1281_v36  ;;  %v1220_v36 = vmul.f32 %v2582_v53, %v3054_v17 }
 0x36e   :  { %v1427_v29 = vsub.f32 %v3067_v3, %v1411_v55 }
 0x370   :  { %1444 = vst.msk [vmem:[%s2806_s2 + $0x8] sm:$0xff] %vm1442_vm3, %v1427_v29  ;;  %v1363_v22 = vpop.permute.xlu1 %1362 }
 0x371   :  { %v1419_v46 = vsel %vm1409_vm2, %v1402_v42, %v1363_v22  ;;  %v1226_v42 = vmul.f32 %v2554_v43, %v3051_v15  ;;  %v3074_v22 = vld [vmem:[#allocation7_spill] sm:$0xff] }
 0x372   :  { %v1435_v41 = vsub.f32 %v3068_v63, %v1419_v46 }
 0x374   :  { %1452 = vst.msk [vmem:[%s2806_s2 + $0x48] sm:$0xff] %vm1442_vm3, %v1435_v41 }
 0x37b   :  { %v1297_v9 = vpop.permute.xlu0 %1296 }
 0x37c   :  { %v1401_v31 = vsel %vm1392_vm1, %v1224_v16, %v1297_v9 }
 0x37f   :  { %v1345_v24 = vpop.permute.xlu0 %1344 }
 0x380   :  { %v1410_v13 = vsel %vm1409_vm2, %v1393_v49, %v1345_v24  ;;  %v1287_v61 = vpop.permute.xlu1 %1286  ;;  %v1228_v49 = vmul.f32 %v2587_v19, %v3056_v21 }
 0x381   :  { %v1426_v0 = vsub.f32 %v3071_v59, %v1410_v13  ;;  %v1396_v23 = vsel %vm1392_vm1, %v1219_v4, %v1287_v61 }
 0x383   :  { %1443 = vst.msk [vmem:[%s2806_s2] sm:$0xff] %vm1442_vm3, %v1426_v0  ;;  %v1361_v35 = vpop.permute.xlu0 %1360 }
 0x384   :  { %v1418_v52 = vsel %vm1409_vm2, %v1401_v31, %v1361_v35  ;;  %v1303_v14 = vpop.permute.xlu1 %1302  ;;  %v3076_v31 = vld [vmem:[#allocation83_spill] sm:$0xff] }
 0x385   :  { %v1434_v51 = vsub.f32 %v3072_v38, %v1418_v52  ;;  %v1404_v27 = vsel %vm1392_vm1, %v1227_v25, %v1303_v14  ;;  %v1230_v35 = vmul.f32 %v2617_v45, %v3076_v31 }
 0x387   :  { %1451 = vst.msk [vmem:[%s2806_s2 + $0x40] sm:$0xff] %vm1442_vm3, %v1434_v51  ;;  %v3078_v51 = vld [vmem:[#allocation49_spill] sm:$0xff] }
 0x388   :  { %v1351_v32 = vpop.permute.xlu1 %1350  ;;  %v1221_v14 = vmul.f32 %v2560_v58, %v3078_v51  ;;  %v1229_v58 = vmul.f32 %v2629_v47, %v3062_v39 }
 0x389   :  { %v1413_v33 = vsel %vm1409_vm2, %v1396_v23, %v1351_v32  ;;  %v3079_v32 = vld [vmem:[#allocation16_spill] sm:$0xff] }
 0x38a   :  { %v1429_v57 = vsub.f32 %v3073_v50, %v1413_v33  ;;  %v3080_v50 = vld [vmem:[#allocation9_spill] sm:$0xff] }
 0x38c   :  { %1446 = vst.msk [vmem:[%s2806_s2 + $0x18] sm:$0xff] %vm1442_vm3, %v1429_v57  ;;  %v1367_v8 = vpop.permute.xlu1 %1366 }
 0x38d   :  { %v1421_v7 = vsel %vm1409_vm2, %v1404_v27, %v1367_v8 }
 0x38e   :  { %v1437_v37 = vsub.f32 %v1758_v26, %v1421_v7 }
 0x38f   :  { %v1285_v55 = vpop.permute.xlu0 %1284 }
 0x390   :  { %1454 = vst.msk [vmem:[%s2806_s2 + $0x58] sm:$0xff] %vm1442_vm3, %v1437_v37  ;;  %v1395_v5 = vsel %vm1392_vm1, %v1218_v2, %v1285_v55  ;;  %v1223_v55 = vmul.f32 %v2643_v18, %v3065_v48 }
 0x393   :  { %v1301_v56 = vpop.permute.xlu0 %1300 }
 0x394   :  { %v1403_v46 = vsel %vm1392_vm1, %v1226_v42, %v1301_v56  ;;  %v1291_v16 = vpop.permute.xlu1 %1290 }
 0x395   :  { %v1398_v23 = vsel %vm1392_vm1, %v1221_v14, %v1291_v16 }
 0x397   :  { %v1349_v3 = vpop.permute.xlu0 %1348 }
 0x398   :  { %v1412_v29 = vsel %vm1409_vm2, %v1395_v5, %v1349_v3  ;;  %v1231_v3 = vmul.f32 %v2648_v30, %v3066_v34 }
 0x399   :  { %v1428_v26 = vsub.f32 %v3074_v22, %v1412_v29 }
 0x39b   :  { %1445 = vst.msk [vmem:[%s2806_s2 + $0x10] sm:$0xff] %vm1442_vm3, %v1428_v26  ;;  %v1365_v63 = vpop.permute.xlu0 %1364 }
 0x39c   :  { %v1420_v12 = vsel %vm1409_vm2, %v1403_v46, %v1365_v63 }
 0x39d   :  { %v1436_v41 = vsub.f32 %v3075_v40, %v1420_v12 }
 0x39f   :  { %1453 = vst.msk [vmem:[%s2806_s2 + $0x50] sm:$0xff] %vm1442_vm3, %v1436_v41 }
 0x3a7   :  { %v1289_v15 = vpop.permute.xlu0 %1288 }
 0x3a8   :  { %v1397_v9 = vsel %vm1392_vm1, %v1220_v36, %v1289_v15 }
 0x3ab   :  { %v1305_v43 = vpop.permute.xlu0 %1304 }
 0x3ac   :  { %v1405_v13 = vsel %vm1392_vm1, %v1228_v49, %v1305_v43 }
 0x3af   :  { %v1353_v6 = vpop.permute.xlu0 %1352 }
 0x3b0   :  { %v1414_v11 = vsel %vm1409_vm2, %v1397_v9, %v1353_v6 }
 0x3b1   :  { %v1430_v24 = vsub.f32 %v2997_v60, %v1414_v11  ;;  %v1222_v60 = vmul.f32 %v2607_v62, %v3059_v28 }
 0x3b3   :  { %1447 = vst.msk [vmem:[%s2806_s2 + $0x20] sm:$0xff] %vm1442_vm3, %v1430_v24  ;;  %v1369_v10 = vpop.permute.xlu0 %1368 }
 0x3b4   :  { %v1422_v53 = vsel %vm1409_vm2, %v1405_v13, %v1369_v10 }
 0x3b5   :  { %v1438_v17 = vsub.f32 %v2998_v1, %v1422_v53  ;;  %v3077_v1 = vld [vmem:[#allocation15_spill] sm:$0xff] }
 0x3b7   :  { %1455 = vst.msk [vmem:[%s2806_s2 + $0x60] sm:$0xff] %vm1442_vm3, %v1438_v17 }
 0x3bb   :  { %v1293_v21 = vpop.permute.xlu0 %1292 }
 0x3bc   :  { %v1399_v59 = vsel %vm1392_vm1, %v1222_v60, %v1293_v21 }
 0x3bf   :  { %v1309_v19 = vpop.permute.xlu0 %1308 }
 0x3c0   :  { %v1407_v4 = vsel %vm1392_vm1, %v1230_v35, %v1309_v19 }
 0x3c3   :  { %v1357_v0 = vpop.permute.xlu0 %1356 }
 0x3c4   :  { %v1416_v61 = vsel %vm1409_vm2, %v1399_v59, %v1357_v0 }
 0x3c5   :  { %v1432_v52 = vsub.f32 %v3077_v1, %v1416_v61  ;;  %v1307_v38 = vpop.permute.xlu1 %1306 }
 0x3c6   :  { %v1406_v27 = vsel %vm1392_vm1, %v1229_v58, %v1307_v38 }
 0x3c7   :  { %1449 = vst.msk [vmem:[%s2806_s2 + $0x30] sm:$0xff] %vm1442_vm3, %v1432_v52  ;;  %v1373_v28 = vpop.permute.xlu0 %1372 }
 0x3c8   :  { %v1424_v62 = vsel %vm1409_vm2, %v1407_v4, %v1373_v28 }
 0x3c9   :  { %v1440_v45 = vsub.f32 %v3079_v32, %v1424_v62  ;;  %v1355_v33 = vpop.permute.xlu1 %1354 }
 0x3ca   :  { %v1415_v25 = vsel %vm1409_vm2, %v1398_v23, %v1355_v33 }
 0x3cb   :  { %1457 = vst.msk [vmem:[%s2806_s2 + $0x70] sm:$0xff] %vm1442_vm3, %v1440_v45  ;;  %v1431_v57 = vsub.f32 %v3080_v50, %v1415_v25 }
 0x3cd   :  { %1448 = vst.msk [vmem:[%s2806_s2 + $0x28] sm:$0xff] %vm1442_vm3, %v1431_v57  ;;  %v1371_v8 = vpop.permute.xlu1 %1370 }
 0x3ce   :  { %v1423_v7 = vsel %vm1409_vm2, %v1406_v27, %v1371_v8 }
 0x3cf   :  { %v1439_v37 = vsub.f32 %v2993_v54, %v1423_v7 }
 0x3d1   :  { %1456 = vst.msk [vmem:[%s2806_s2 + $0x68] sm:$0xff] %vm1442_vm3, %v1439_v37  ;;  %v1295_v39 = vpop.permute.xlu1 %1294 }
 0x3d2   :  { %v1400_v56 = vsel %vm1392_vm1, %v1223_v55, %v1295_v39 }
 0x3d5   :  { %v1311_v47 = vpop.permute.xlu1 %1310 }
 0x3d6   :  { %v1408_v29 = vsel %vm1392_vm1, %v1231_v3, %v1311_v47 }
 0x3d9   :  { %v1359_v2 = vpop.permute.xlu1 %1358 }
 0x3da   :  { %v1417_v5 = vsel %vm1409_vm2, %v1400_v56, %v1359_v2 }
 0x3db   :  { %v1433_v54 = vsub.f32 %v2999_v20, %v1417_v5 }
 0x3dd   :  { %1450 = vst.msk [vmem:[%s2806_s2 + $0x38] sm:$0xff] %vm1442_vm3, %v1433_v54  ;;  %v1375_v42 = vpop.permute.xlu1 %1374 }
 0x3de   :  { %v1425_v48 = vsel %vm1409_vm2, %v1408_v29, %v1375_v42 }
 0x3df   :  { %v1441_v18 = vsub.f32 %v3001_v44, %v1425_v48 }
 0x3e1   :  { %1458 = vst.msk [vmem:[%s2806_s2 + $0x78] sm:$0xff] %vm1442_vm3, %v1441_v18 }

</bundles_post_ra>
